<compile_context>
chip_gen: v5e
topology: v5e:2x2
jax: 0.10.0
libtpu: 0.0.40
codegen_flags: <defaults>
</compile_context>

<pallas_src>
import functools
import math

import numpy as np
import jax
import jax.numpy as jnp
from jax.experimental import pallas as pl
from jax.experimental.pallas import tpu as pltpu


# ----------------------------- helpers --------------------------------------

def _layernorm(x, g, b, eps=1e-5):
    mu = jnp.mean(x, axis=-1, keepdims=True)
    var = jnp.mean((x - mu) ** 2, axis=-1, keepdims=True)
    return (x - mu) * jax.lax.rsqrt(var + eps) * g + b


def _pick_block_batch(B, Tp, target_rows=256):
    """Smallest divisor of B whose row count Bt*Tp reaches the MXU target.

    Note: small nb minimizes HBM re-streaming of the layer weights; on v7x one
    may prefer nb >= 2 so the 'parallel' batch axis spans both TensorCores.
    """
    for bt in range(1, B + 1):
        if B % bt == 0 and bt * Tp >= target_rows:
            return bt
    return B


def _vmem_limit_bytes():
    """Generation-aware scoped-VMEM limit (default scoped limit is too small
    to hold double-buffered layer weights + f32 activations)."""
    try:
        info = pltpu.get_tpu_info()
        cap = getattr(info, "vmem_capacity_bytes", None)
        if cap:
            return int(min(cap * 7 // 8, 100 * 1024 * 1024))
    except Exception:
        pass
    return 64 * 1024 * 1024


# ----------------------------- Pallas kernels -------------------------------

def encoder_stack_kernel(x_ref, onehot_ref, cos_ref, sin_ref,
                         te_tab_ref, ln1g_ref, ln1b_ref, wattn_ref,
                         ln2g_ref, ln2b_ref, w1_ref, b1_ref, w2_ref, b2_ref,
                         o_ref, attn_sc,
                         *, H, Dh, d_ff, T_valid, ff_chunk):
    layer = pl.program_id(1)

    # o_ref doubles as the VMEM-resident activation accumulator across layers
    # (its block index is constant along the depth axis).
    @pl.when(layer == 0)
    def _():
        o_ref[...] = x_ref[...].astype(jnp.float32)

    Bt, Tp, C = o_ref.shape
    R = Bt * Tp

    x = o_ref[...].reshape(R, C)                                    # f32 (R, C)

    # --- attention branch ---
    ln1 = _layernorm(x, ln1g_ref[0], ln1b_ref[0])
    qkv = jnp.dot(ln1.astype(jnp.bfloat16), wattn_ref[0],
                  preferred_element_type=jnp.float32)               # (R, 3C)

    # in-kernel type-embedding gather: bf16 one-hot x small bf16 table (MXU)
    onehot = onehot_ref[...].reshape(R, -1)                         # (R, n_type_pad)
    te = jnp.dot(onehot, te_tab_ref[0],
                 preferred_element_type=jnp.float32)                # (R, 2C)

    q = qkv[:, :C] + te[:, :C]
    k = qkv[:, C:2 * C] + te[:, C:]
    v = qkv[:, 2 * C:]

    # interleaved RoPE; cos/sin come pre-replicated across heads, bf16 in HBM,
    # sign of rotate_half folded into the sin table host-side.
    cos = cos_ref[...].astype(jnp.float32).reshape(R, C)
    sin = sin_ref[...].astype(jnp.float32).reshape(R, C)
    even = (jax.lax.broadcasted_iota(jnp.int32, (R, C), 1) % 2) == 0

    def rope(t):
        if C % 128 == 0:
            # lane-aligned: one XLU rotate per direction (wrapped edges are
            # never selected by the even/odd mask)
            nxt = pltpu.roll(t, shift=C - 1, axis=1)   # nxt[i] = t[i+1]
            prv = pltpu.roll(t, shift=1, axis=1)       # prv[i] = t[i-1]
        else:
            # small-C fallback (test shapes): edge-clamped slice+concat
            nxt = jnp.concatenate([t[:, 1:], t[:, -1:]], axis=-1)
            prv = jnp.concatenate([t[:, :1], t[:, :-1]], axis=-1)
        return t * cos + jnp.where(even, nxt, prv) * sin

    scale = 1.0 / math.sqrt(Dh)
    qb = (rope(q) * scale).astype(jnp.bfloat16).reshape(Bt, Tp, C)
    kb = rope(k).astype(jnp.bfloat16).reshape(Bt, Tp, C)
    vb = v.astype(jnp.bfloat16).reshape(Bt, Tp, C)

    # mask padded key positions (stays f32; -1e30 overflows bf16)
    kmask = jnp.where(
        jax.lax.broadcasted_iota(jnp.int32, (Tp, Tp), 1) < T_valid, 0.0, -1e30)

    for h in range(H):                                              # H static
        sl = slice(h * Dh, (h + 1) * Dh)
        s = jnp.einsum('btd,bsd->bts', qb[..., sl], kb[..., sl],
                       preferred_element_type=jnp.float32) + kmask
        s = s - jnp.max(s, axis=-1, keepdims=True)
        p = jnp.exp(s)
        p = p * pl.reciprocal(jnp.sum(p, axis=-1, keepdims=True), approx=True)
        head_o = jnp.einsum('bts,bsd->btd', p.astype(jnp.bfloat16), vb[..., sl],
                            preferred_element_type=jnp.float32)
        attn_sc[:, sl] = head_o.reshape(R, Dh)                      # cheap vst

    x = x + attn_sc[...]

    # --- SwiGLU feed-forward branch (chunked over d_ff) ---
    ln2 = _layernorm(x, ln2g_ref[0], ln2b_ref[0]).astype(jnp.bfloat16)
    ff = jnp.zeros((R, C), jnp.float32)
    for c0 in range(0, d_ff, ff_chunk):
        c1 = c0 + ff_chunk
        a = jnp.dot(ln2, w1_ref[0, :, c0:c1],
                    preferred_element_type=jnp.float32) + b1_ref[0, :, c0:c1]
        g = jnp.dot(ln2, w1_ref[0, :, d_ff + c0:d_ff + c1],
                    preferred_element_type=jnp.float32) + b1_ref[0, :, d_ff + c0:d_ff + c1]
        sw = a * (g * jax.nn.sigmoid(g))                            # SwiGLU
        ff = ff + jnp.dot(sw.astype(jnp.bfloat16), w2_ref[0, c0:c1, :],
                          preferred_element_type=jnp.float32)
    x = x + ff + b2_ref[0]

    o_ref[...] = x.reshape(Bt, Tp, C)


def tail_kernel(x_ref, ng_ref, nb_ref, w1_ref, b1_ref, w2_ref, b2_ref,
                hg_ref, hb_ref, wo_ref, bo_ref, o_ref,
                *, d_ff, n_layers, binary):
    """Fused TranslationFF stack + final LayerNorm/Linear + BinaryQuantizer."""
    res = x_ref[...].astype(jnp.float32)          # reserved = original CLS
    x = res                                       # evolving CLS state
    for i in range(n_layers):                     # small static loop
        cat = jnp.concatenate([res, x], axis=-1)
        ln = _layernorm(cat, ng_ref[i], nb_ref[i])
        h1 = jnp.dot(ln.astype(jnp.bfloat16), w1_ref[i],
                     preferred_element_type=jnp.float32) + b1_ref[i]
        a = h1[:, :d_ff]
        gate = h1[:, d_ff:]
        sw = a * (gate * jax.nn.sigmoid(gate))
        x = jnp.dot(sw.astype(jnp.bfloat16), w2_ref[i],
                    preferred_element_type=jnp.float32) + b2_ref[i] + x
    ln = _layernorm(x, hg_ref[...], hb_ref[...])
    logits = jnp.dot(ln.astype(jnp.bfloat16), wo_ref[...],
                     preferred_element_type=jnp.float32) + bo_ref[...]
    if binary:
        logits = jnp.round(jax.nn.sigmoid(logits))   # BinaryQuantizer (eval)
    o_ref[...] = logits.astype(o_ref.dtype)


# ------------------------------ JAX glue -------------------------------------

def build_rope_cos_sin(seq_order_padded, Dh, dp):
    """positions (list of (B, Tp)) -> cos, sign-folded sin of shape (B, Tp, Dh)."""
    B, Tp = seq_order_padded[0].shape
    inv_freq = jnp.asarray(
        1.0 / (10000.0 ** (np.arange(0, dp, 2, dtype=np.float32) / dp)))
    cos_parts, sin_parts = [], []
    for s in seq_order_padded:
        ang = s[:, :, None] * inv_freq[None, None, :]                # (B,Tp,dp/2)
        ang = jnp.repeat(ang, 2, axis=-1)                            # interleaved
        cos_parts.append(jnp.cos(ang))
        sin_parts.append(jnp.sin(ang))
    rem = Dh - len(seq_order_padded) * dp
    if rem > 0:
        cos_parts.append(jnp.ones((B, Tp, rem), jnp.float32))
        sin_parts.append(jnp.zeros((B, Tp, rem), jnp.float32))
    cos = jnp.concatenate(cos_parts, axis=-1)                        # (B,Tp,Dh)
    sin = jnp.concatenate(sin_parts, axis=-1)
    sign = np.ones((Dh,), np.float32)
    sign[0::2] = -1.0                                                # rotate_half sign
    return cos, sin * jnp.asarray(sign)[None, None, :]


def run_encoder_stack(x, onehot, cos, sin, stacked, *, H, d_ff, T_valid):
    B, Tp, C = x.shape
    Dh = C // H
    n_type_pad = onehot.shape[-1]
    depth = stacked['w_attn'].shape[0]
    bt = _pick_block_batch(B, Tp)
    nb = B // bt

    ff_chunk = d_ff
    while ff_chunk > 1024 and ff_chunk % 2 == 0:   # bound FFN live set
        ff_chunk //= 2

    kernel = functools.partial(encoder_stack_kernel, H=H, Dh=Dh, d_ff=d_ff,
                               T_valid=T_valid, ff_chunk=ff_chunk)

    def per_layer(shape):
        return pl.BlockSpec((1,) + shape, lambda b, l: (l,) + (0,) * len(shape))

    in_specs = [
        pl.BlockSpec((bt, Tp, C), lambda b, l: (b, 0, 0)),           # x (f32)
        pl.BlockSpec((bt, Tp, n_type_pad), lambda b, l: (b, 0, 0)),  # one-hot type ids (bf16)
        pl.BlockSpec((bt, Tp, C), lambda b, l: (b, 0, 0)),           # cos (bf16)
        pl.BlockSpec((bt, Tp, C), lambda b, l: (b, 0, 0)),           # sin*sign (bf16)
        per_layer((n_type_pad, 2 * C)),                              # type-embed table (bf16)
        per_layer((1, C)), per_layer((1, C)),                        # ln1 g/b
        per_layer((C, 3 * C)),                                       # w_attn (bf16)
        per_layer((1, C)), per_layer((1, C)),                        # ln2 g/b
        per_layer((C, 2 * d_ff)), per_layer((1, 2 * d_ff)),          # w1 (bf16) / b1
        per_layer((d_ff, C)), per_layer((1, C)),                     # w2 (bf16) / b2
    ]

    return pl.pallas_call(
        kernel,
        out_shape=jax.ShapeDtypeStruct((B, Tp, C), jnp.float32),
        grid=(nb, depth),
        in_specs=in_specs,
        out_specs=pl.BlockSpec((bt, Tp, C), lambda b, l: (b, 0, 0)),
        scratch_shapes=[pltpu.VMEM((bt * Tp, C), jnp.float32)],      # head-output slab
        compiler_params=pltpu.CompilerParams(
            dimension_semantics=("parallel", "arbitrary"),
            vmem_limit_bytes=_vmem_limit_bytes()),
    )(x, onehot, cos, sin,
      stacked['te_tab'], stacked['ln1_g'], stacked['ln1_b'], stacked['w_attn'],
      stacked['ln2_g'], stacked['ln2_b'],
      stacked['w1'], stacked['b1'], stacked['w2'], stacked['b2'])


def run_tail(x0, params, *, d_ff, n_bits, binary):
    B, C = x0.shape
    n_pad = max(128, ((n_bits + 127) // 128) * 128)   # lane-dense logits
    w_out = jnp.zeros((C, n_pad), jnp.bfloat16).at[:, :n_bits].set(
        params['w_out'].astype(jnp.bfloat16))
    b_out = jnp.zeros((1, n_pad), jnp.float32).at[:, :n_bits].set(
        params['b_out'].astype(jnp.float32))

    tl = params['translation']
    n_layers = len(tl)
    if n_layers > 0:
        stk = {k: jnp.stack([t[k] for t in tl], axis=0)
               for k in ('n_g', 'n_b', 'w1', 'b1', 'w2', 'b2')}
    else:  # dummy (unused) single-layer stack so ref shapes stay non-empty
        stk = dict(n_g=jnp.ones((1, 1, 2 * C)), n_b=jnp.zeros((1, 1, 2 * C)),
                   w1=jnp.zeros((1, 2 * C, 2 * d_ff), jnp.bfloat16),
                   b1=jnp.zeros((1, 1, 2 * d_ff)),
                   w2=jnp.zeros((1, d_ff, C), jnp.bfloat16),
                   b2=jnp.zeros((1, 1, C)))

    kernel = functools.partial(tail_kernel, d_ff=d_ff,
                               n_layers=n_layers, binary=binary)
    vm = pl.BlockSpec(memory_space=pltpu.MemorySpace.VMEM)
    out = pl.pallas_call(
        kernel,
        out_shape=jax.ShapeDtypeStruct((B, n_pad), jnp.float32),
        in_specs=[vm] * 11,
        out_specs=vm,
    )(x0, stk['n_g'], stk['n_b'], stk['w1'], stk['b1'], stk['w2'], stk['b2'],
      params['norm_g'], params['norm_b'], w_out, b_out)
    return out[:, :n_bits]


def init_params(key, cfg):
    C, d_ff = cfg['d_model'], cfg['d_ff']

    def nrm(k, shape, scale=0.02, dtype=jnp.float32):
        return (scale * jax.random.normal(k, shape, jnp.float32)).astype(dtype)

    keys = iter(jax.random.split(key, 256))
    params = {
        'embedding': nrm(next(keys), (cfg['n_embedding'], C)),
        'type_embedding': nrm(next(keys), (cfg['n_type_embedding'], C)),
        'layers': [], 'translation': [],
        'norm_g': jnp.ones((1, C)), 'norm_b': jnp.zeros((1, C)),
        'w_out': nrm(next(keys), (C, cfg['n_bits']), dtype=jnp.bfloat16),
        'b_out': jnp.zeros((1, cfg['n_bits'])),
    }
    for _ in range(cfg['depth']):
        params['layers'].append(dict(
            type_embedding=nrm(next(keys), (cfg['n_type_embedding'], 2 * C),
                               dtype=jnp.bfloat16),
            ln1_g=jnp.ones((1, C)), ln1_b=jnp.zeros((1, C)),
            w_attn=nrm(next(keys), (C, 3 * C), dtype=jnp.bfloat16),
            ln2_g=jnp.ones((1, C)), ln2_b=jnp.zeros((1, C)),
            w1=nrm(next(keys), (C, 2 * d_ff), dtype=jnp.bfloat16),
            b1=jnp.zeros((1, 2 * d_ff)),
            w2=nrm(next(keys), (d_ff, C), dtype=jnp.bfloat16),
            b2=jnp.zeros((1, C)),
        ))
    for _ in range(cfg['n_translation_layers']):
        params['translation'].append(dict(
            n_g=jnp.ones((1, 2 * C)), n_b=jnp.zeros((1, 2 * C)),
            w1=nrm(next(keys), (2 * C, 2 * d_ff), dtype=jnp.bfloat16),
            b1=jnp.zeros((1, 2 * d_ff)),
            w2=nrm(next(keys), (d_ff, C), dtype=jnp.bfloat16),
            b2=jnp.zeros((1, C)),
        ))
    return params


def encoder_forward(params, x_type, x_value, seq_order, cfg):
    """Eval-mode forward (dropout / partial-encoding mask / noise are no-ops)."""
    C, H, d_ff = cfg['d_model'], cfg['num_heads'], cfg['d_ff']
    n_axes = cfg['num_rotation_axis']
    n_type = cfg['n_type_embedding']
    Dh = C // H
    dp = Dh // (n_axes + 1)

    B, L = x_type.shape
    T = L + 1                               # +CLS
    Tp = ((T + 15) // 16) * 16              # pad seq to a bf16-sublane multiple
    pad_t = Tp - T

    mask = jnp.ones((B, L), jnp.float32)    # eval: all ones
    ones_col = jnp.ones((B, 1), jnp.float32)
    zeros_col = jnp.zeros((B, 1), jnp.float32)

    new_seq_order = [jnp.concatenate([zeros_col, s.astype(jnp.float32) * mask], axis=1)
                     for s in seq_order]
    v_ids = jnp.concatenate([ones_col, x_value.astype(jnp.float32) * mask],
                            axis=1).astype(jnp.int32)
    t_ids = jnp.concatenate([ones_col, x_type.astype(jnp.float32) * mask],
                            axis=1).astype(jnp.int32)

    # embedding lookups (gathers) stay in plain JAX outside the kernels
    x = params['embedding'][v_ids] + params['type_embedding'][t_ids]   # (B,T,C)
    x = jnp.pad(x, ((0, 0), (0, pad_t), (0, 0)))

    # layer-invariant bf16 one-hot type ids for the in-kernel table gather
    n_type_pad = max(8, ((n_type + 7) // 8) * 8)
    t_ids_pad = jnp.pad(t_ids, ((0, 0), (0, pad_t)))
    onehot = jax.nn.one_hot(t_ids_pad, n_type_pad, dtype=jnp.bfloat16)  # (B,Tp,ntp)

    seq_pad = [jnp.pad(s, ((0, 0), (0, pad_t))) for s in new_seq_order]
    cos, sin_signed = build_rope_cos_sin(seq_pad, Dh, dp)               # (B,Tp,Dh)
    cos = jnp.tile(cos, (1, 1, H)).astype(jnp.bfloat16)                 # (B,Tp,C)
    sin_signed = jnp.tile(sin_signed, (1, 1, H)).astype(jnp.bfloat16)

    te_tab = jnp.stack(
        [jnp.pad(lyr['type_embedding'].astype(jnp.bfloat16),
                 ((0, n_type_pad - n_type), (0, 0)))
         for lyr in params['layers']], axis=0)              # (depth,ntp,2C) bf16

    stacked = {k: jnp.stack([lyr[k] for lyr in params['layers']], axis=0)
               for k in ('ln1_g', 'ln1_b', 'w_attn', 'ln2_g', 'ln2_b',
                         'w1', 'b1', 'w2', 'b2')}
    stacked['te_tab'] = te_tab

    x = run_encoder_stack(x, onehot, cos, sin_signed, stacked,
                          H=H, d_ff=d_ff, T_valid=T)

    x0 = x[:, 0, :]                                                     # CLS token
    return run_tail(x0, params, d_ff=d_ff, n_bits=cfg['n_bits'],
                    binary=cfg['binary_encodings'])


# --------------------------------- main ---------------------------------------

if __name__ == "__main__":
    cfg = dict(n_embedding=16, n_type_embedding=8, d_model=32, num_heads=4,
               d_ff=32, depth=2, n_translation_layers=2, n_bits=8,
               binary_encodings=True, num_rotation_axis=1)

    key = jax.random.PRNGKey(0)
    kp, k1, k2 = jax.random.split(key, 3)
    params = init_params(kp, cfg)

    B, L = 2, 8
    x_type = jax.random.randint(k1, (B, L), 0, cfg['n_type_embedding'], jnp.int32)
    x_value = jax.random.randint(k2, (B, L), 0, cfg['n_embedding'], jnp.int32)
    seq_order = [jnp.tile(jnp.arange(1, L + 1, dtype=jnp.float32)[None, :], (B, 1))]

    out = encoder_forward(params, x_type, x_value, seq_order, cfg)
    out = jax.block_until_ready(out)
    assert out.shape == (B, cfg['n_bits']) and out.dtype == jnp.float32
    print("KERNEL_OK")
</pallas_src>

<mosaic_0001>
module attributes {stable_mosaic.version = 11 : i64} {
  func.func @encoder_stack_kernel(%arg0: i32, %arg1: i32, %arg2: memref<2x16x32xf32, #tpu.memory_space<vmem>>, %arg3: memref<2x16x8xbf16, #tpu.memory_space<vmem>>, %arg4: memref<2x16x32xbf16, #tpu.memory_space<vmem>>, %arg5: memref<2x16x32xbf16, #tpu.memory_space<vmem>>, %arg6: memref<1x8x64xbf16, #tpu.memory_space<vmem>>, %arg7: memref<1x1x32xf32, #tpu.memory_space<vmem>>, %arg8: memref<1x1x32xf32, #tpu.memory_space<vmem>>, %arg9: memref<1x32x96xbf16, #tpu.memory_space<vmem>>, %arg10: memref<1x1x32xf32, #tpu.memory_space<vmem>>, %arg11: memref<1x1x32xf32, #tpu.memory_space<vmem>>, %arg12: memref<1x32x64xbf16, #tpu.memory_space<vmem>>, %arg13: memref<1x1x64xf32, #tpu.memory_space<vmem>>, %arg14: memref<1x32x32xbf16, #tpu.memory_space<vmem>>, %arg15: memref<1x1x32xf32, #tpu.memory_space<vmem>>, %arg16: memref<2x16x32xf32, #tpu.memory_space<vmem>>, %arg17: memref<32x32xf32, #tpu.memory_space<vmem>>) attributes {dimension_semantics = [#tpu.dimension_semantics<parallel>, #tpu.dimension_semantics<arbitrary>], iteration_bounds = array<i64: 1, 2>, scalar_prefetch = 0 : i64, scratch_operands = 1 : i64, tpu.core_type = #tpu.core_type<tc>, window_params = [{transform_indices = @transform_0, window_bounds = array<i64: 2, 16, 32>}, {transform_indices = @transform_1, window_bounds = array<i64: 2, 16, 8>}, {transform_indices = @transform_2, window_bounds = array<i64: 2, 16, 32>}, {transform_indices = @transform_3, window_bounds = array<i64: 2, 16, 32>}, {transform_indices = @transform_4, window_bounds = array<i64: 1, 8, 64>}, {transform_indices = @transform_5, window_bounds = array<i64: 1, 1, 32>}, {transform_indices = @transform_6, window_bounds = array<i64: 1, 1, 32>}, {transform_indices = @transform_7, window_bounds = array<i64: 1, 32, 96>}, {transform_indices = @transform_8, window_bounds = array<i64: 1, 1, 32>}, {transform_indices = @transform_9, window_bounds = array<i64: 1, 1, 32>}, {transform_indices = @transform_10, window_bounds = array<i64: 1, 32, 64>}, {transform_indices = @transform_11, window_bounds = array<i64: 1, 1, 64>}, {transform_indices = @transform_12, window_bounds = array<i64: 1, 32, 32>}, {transform_indices = @transform_13, window_bounds = array<i64: 1, 1, 32>}, {transform_indices = @transform_14, window_bounds = array<i64: 2, 16, 32>}]} {
    %c0_i32 = arith.constant 0 : i32
    %0 = arith.cmpi eq, %arg1, %c0_i32 : i32
    %1 = arith.extui %0 : i1 to i32
    %c0_i32_0 = arith.constant 0 : i32
    %2 = arith.cmpi ne, %1, %c0_i32_0 : i32
    scf.if %2 {
      %c0_97 = arith.constant 0 : index
      %c0_98 = arith.constant 0 : index
      %c0_99 = arith.constant 0 : index
      %253 = vector.load %arg2[%c0_97, %c0_98, %c0_99] : memref<2x16x32xf32, #tpu.memory_space<vmem>>, vector<2x16x32xf32>
      %c0_100 = arith.constant 0 : index
      %c0_101 = arith.constant 0 : index
      %c0_102 = arith.constant 0 : index
      %254 = vector.load %arg16[%c0_100, %c0_101, %c0_102] : memref<2x16x32xf32, #tpu.memory_space<vmem>>, vector<2x16x32xf32>
      tpu.vector_store %arg16[%c0_100, %c0_101, %c0_102], %253 {strides = array<i32>} : memref<2x16x32xf32, #tpu.memory_space<vmem>>, vector<2x16x32xf32>,
    } else {
    }
    %c0 = arith.constant 0 : index
    %c0_1 = arith.constant 0 : index
    %c0_2 = arith.constant 0 : index
    %3 = vector.load %arg16[%c0, %c0_1, %c0_2] : memref<2x16x32xf32, #tpu.memory_space<vmem>>, vector<2x16x32xf32>
    %4 = vector.shape_cast %3 : vector<2x16x32xf32> to vector<32x32xf32>
    %c0_3 = arith.constant 0 : index
    %c0_4 = arith.constant 0 : index
    %c0_5 = arith.constant 0 : index
    %5 = vector.load %arg7[%c0_3, %c0_4, %c0_5] : memref<1x1x32xf32, #tpu.memory_space<vmem>>, vector<1x1x32xf32>
    %6 = vector.shape_cast %5 : vector<1x1x32xf32> to vector<1x32xf32>
    %c0_6 = arith.constant 0 : index
    %c0_7 = arith.constant 0 : index
    %c0_8 = arith.constant 0 : index
    %7 = vector.load %arg8[%c0_6, %c0_7, %c0_8] : memref<1x1x32xf32, #tpu.memory_space<vmem>>, vector<1x1x32xf32>
    %8 = vector.shape_cast %7 : vector<1x1x32xf32> to vector<1x32xf32>
    %cst = arith.constant dense<0.000000e+00> : vector<32xf32>
    %9 = vector.multi_reduction <add>, %4, %cst [1] : vector<32x32xf32> to vector<32xf32>
    %10 = vector.shape_cast %9 : vector<32xf32> to vector<32x1xf32>
    %cst_9 = arith.constant 3.200000e+01 : f32
    %11 = vector.broadcast %cst_9 : f32 to vector<32x1xf32>
    %12 = arith.divf %10, %11 : vector<32x1xf32>
    %13 = vector.broadcast %12 : vector<32x1xf32> to vector<32x32xf32>
    %14 = arith.subf %4, %13 : vector<32x32xf32>
    %15 = arith.mulf %14, %14 : vector<32x32xf32>
    %cst_10 = arith.constant dense<0.000000e+00> : vector<32xf32>
    %16 = vector.multi_reduction <add>, %15, %cst_10 [1] : vector<32x32xf32> to vector<32xf32>
    %17 = vector.shape_cast %16 : vector<32xf32> to vector<32x1xf32>
    %cst_11 = arith.constant 3.200000e+01 : f32
    %18 = vector.broadcast %cst_11 : f32 to vector<32x1xf32>
    %19 = arith.divf %17, %18 : vector<32x1xf32>
    %20 = vector.broadcast %12 : vector<32x1xf32> to vector<32x32xf32>
    %21 = arith.subf %4, %20 : vector<32x32xf32>
    %cst_12 = arith.constant 9.99999974E-6 : f32
    %22 = vector.broadcast %cst_12 : f32 to vector<32x1xf32>
    %23 = arith.addf %19, %22 : vector<32x1xf32>
    %24 = math.rsqrt %23 : vector<32x1xf32>
    %25 = vector.broadcast %24 : vector<32x1xf32> to vector<32x32xf32>
    %26 = arith.mulf %21, %25 : vector<32x32xf32>
    %27 = vector.broadcast %6 : vector<1x32xf32> to vector<32x32xf32>
    %28 = arith.mulf %26, %27 : vector<32x32xf32>
    %29 = vector.broadcast %8 : vector<1x32xf32> to vector<32x32xf32>
    %30 = arith.addf %28, %29 : vector<32x32xf32>
    %31 = arith.truncf %30 : vector<32x32xf32> to vector<32x32xbf16>
    %c0_13 = arith.constant 0 : index
    %c0_14 = arith.constant 0 : index
    %c0_15 = arith.constant 0 : index
    %32 = vector.load %arg9[%c0_13, %c0_14, %c0_15] : memref<1x32x96xbf16, #tpu.memory_space<vmem>>, vector<1x32x96xbf16>
    %33 = vector.shape_cast %32 : vector<1x32x96xbf16> to vector<32x96xbf16>
    %cst_16 = arith.constant dense<0.000000e+00> : vector<32x96xf32>
    %34 = tpu.matmul %31, %33, %cst_16 {dimension_numbers = #tpu.dot_dimension_numbers<[1], [0], [0], [1], [0, 0, 1, 1], [], []>} : vector<32x32xbf16>, vector<32x96xbf16>, vector<32x96xf32> -> vector<32x96xf32>
    %c0_17 = arith.constant 0 : index
    %c0_18 = arith.constant 0 : index
    %c0_19 = arith.constant 0 : index
    %35 = vector.load %arg3[%c0_17, %c0_18, %c0_19] : memref<2x16x8xbf16, #tpu.memory_space<vmem>>, vector<2x16x8xbf16>
    %36 = vector.shape_cast %35 : vector<2x16x8xbf16> to vector<32x8xbf16>
    %c0_20 = arith.constant 0 : index
    %c0_21 = arith.constant 0 : index
    %c0_22 = arith.constant 0 : index
    %37 = vector.load %arg6[%c0_20, %c0_21, %c0_22] : memref<1x8x64xbf16, #tpu.memory_space<vmem>>, vector<1x8x64xbf16>
    %38 = vector.shape_cast %37 : vector<1x8x64xbf16> to vector<8x64xbf16>
    %cst_23 = arith.constant dense<0.000000e+00> : vector<32x64xf32>
    %39 = tpu.matmul %36, %38, %cst_23 {dimension_numbers = #tpu.dot_dimension_numbers<[1], [0], [0], [1], [0, 0, 1, 1], [], []>} : vector<32x8xbf16>, vector<8x64xbf16>, vector<32x64xf32> -> vector<32x64xf32>
    %40 = vector.extract_strided_slice %34 {offsets = [0, 0], sizes = [32, 32], strides = [1, 1]} : vector<32x96xf32> to vector<32x32xf32>
    %41 = vector.extract_strided_slice %39 {offsets = [0, 0], sizes = [32, 32], strides = [1, 1]} : vector<32x64xf32> to vector<32x32xf32>
    %42 = arith.addf %40, %41 : vector<32x32xf32>
    %43 = vector.extract_strided_slice %34 {offsets = [0, 32], sizes = [32, 32], strides = [1, 1]} : vector<32x96xf32> to vector<32x32xf32>
    %44 = vector.extract_strided_slice %39 {offsets = [0, 32], sizes = [32, 32], strides = [1, 1]} : vector<32x64xf32> to vector<32x32xf32>
    %45 = arith.addf %43, %44 : vector<32x32xf32>
    %46 = vector.extract_strided_slice %34 {offsets = [0, 64], sizes = [32, 32], strides = [1, 1]} : vector<32x96xf32> to vector<32x32xf32>
    %c0_24 = arith.constant 0 : index
    %c0_25 = arith.constant 0 : index
    %c0_26 = arith.constant 0 : index
    %47 = vector.load %arg4[%c0_24, %c0_25, %c0_26] : memref<2x16x32xbf16, #tpu.memory_space<vmem>>, vector<2x16x32xbf16>
    %48 = arith.extf %47 : vector<2x16x32xbf16> to vector<2x16x32xf32>
    %49 = vector.shape_cast %48 : vector<2x16x32xf32> to vector<32x32xf32>
    %c0_27 = arith.constant 0 : index
    %c0_28 = arith.constant 0 : index
    %c0_29 = arith.constant 0 : index
    %50 = vector.load %arg5[%c0_27, %c0_28, %c0_29] : memref<2x16x32xbf16, #tpu.memory_space<vmem>>, vector<2x16x32xbf16>
    %51 = arith.extf %50 : vector<2x16x32xbf16> to vector<2x16x32xf32>
    %52 = vector.shape_cast %51 : vector<2x16x32xf32> to vector<32x32xf32>
    %53 = tpu.iota {dimensions = array<i32: 1>} : vector<32x32xi32>
    %c2_i32 = arith.constant 2 : i32
    %c0_i32_30 = arith.constant 0 : i32
    %54 = arith.cmpi eq, %c2_i32, %c0_i32_30 : i32
    %c1_i32 = arith.constant 1 : i32
    %55 = arith.select %54, %c1_i32, %c2_i32 : i32
    %56 = vector.broadcast %55 : i32 to vector<32x32xi32>
    %57 = arith.remsi %53, %56 : vector<32x32xi32>
    %c0_i32_31 = arith.constant 0 : i32
    %58 = vector.broadcast %c0_i32_31 : i32 to vector<32x32xi32>
    %59 = arith.cmpi ne, %57, %58 : vector<32x32xi32>
    %c0_i32_32 = arith.constant 0 : i32
    %60 = vector.broadcast %c0_i32_32 : i32 to vector<32x32xi32>
    %61 = arith.cmpi slt, %57, %60 : vector<32x32xi32>
    %c0_i32_33 = arith.constant 0 : i32
    %62 = arith.cmpi slt, %55, %c0_i32_33 : i32
    %63 = vector.broadcast %62 : i1 to vector<32x32xi1>
    %64 = vector.broadcast %63 : vector<32x32xi1> to vector<32x32xi1>
    %65 = arith.xori %61, %64 : vector<32x32xi1>
    %66 = arith.andi %65, %59 : vector<32x32xi1>
    %67 = vector.broadcast %55 : i32 to vector<32x32xi32>
    %68 = arith.addi %57, %67 : vector<32x32xi32>
    %69 = arith.select %66, %68, %57 : vector<32x32xi1>, vector<32x32xi32>
    %c0_i32_34 = arith.constant 0 : i32
    %70 = vector.broadcast %c0_i32_34 : i32 to vector<32x32xi32>
    %71 = arith.cmpi eq, %69, %70 : vector<32x32xi32>
    %72 = vector.extract_strided_slice %42 {offsets = [0, 1], sizes = [32, 31], strides = [1, 1]} : vector<32x32xf32> to vector<32x31xf32>
    %73 = vector.extract_strided_slice %42 {offsets = [0, 31], sizes = [32, 1], strides = [1, 1]} : vector<32x32xf32> to vector<32x1xf32>
    %74 = tpu.concatenate %72, %73 in 1 : vector<32x31xf32>, vector<32x1xf32> -> vector<32x32xf32>
    %75 = vector.extract_strided_slice %42 {offsets = [0, 0], sizes = [32, 1], strides = [1, 1]} : vector<32x32xf32> to vector<32x1xf32>
    %76 = vector.extract_strided_slice %42 {offsets = [0, 0], sizes = [32, 31], strides = [1, 1]} : vector<32x32xf32> to vector<32x31xf32>
    %77 = tpu.concatenate %75, %76 in 1 : vector<32x1xf32>, vector<32x31xf32> -> vector<32x32xf32>
    %78 = arith.mulf %42, %49 : vector<32x32xf32>
    %79 = arith.select %71, %74, %77 : vector<32x32xi1>, vector<32x32xf32>
    %80 = arith.mulf %79, %52 : vector<32x32xf32>
    %81 = arith.addf %78, %80 : vector<32x32xf32>
    %cst_35 = arith.constant 0.353553385 : f32
    %82 = vector.broadcast %cst_35 : f32 to vector<32x32xf32>
    %83 = arith.mulf %81, %82 : vector<32x32xf32>
    %84 = arith.truncf %83 : vector<32x32xf32> to vector<32x32xbf16>
    %85 = vector.shape_cast %84 : vector<32x32xbf16> to vector<2x16x32xbf16>
    %86 = vector.extract_strided_slice %45 {offsets = [0, 1], sizes = [32, 31], strides = [1, 1]} : vector<32x32xf32> to vector<32x31xf32>
    %87 = vector.extract_strided_slice %45 {offsets = [0, 31], sizes = [32, 1], strides = [1, 1]} : vector<32x32xf32> to vector<32x1xf32>
    %88 = tpu.concatenate %86, %87 in 1 : vector<32x31xf32>, vector<32x1xf32> -> vector<32x32xf32>
    %89 = vector.extract_strided_slice %45 {offsets = [0, 0], sizes = [32, 1], strides = [1, 1]} : vector<32x32xf32> to vector<32x1xf32>
    %90 = vector.extract_strided_slice %45 {offsets = [0, 0], sizes = [32, 31], strides = [1, 1]} : vector<32x32xf32> to vector<32x31xf32>
    %91 = tpu.concatenate %89, %90 in 1 : vector<32x1xf32>, vector<32x31xf32> -> vector<32x32xf32>
    %92 = arith.mulf %45, %49 : vector<32x32xf32>
    %93 = arith.select %71, %88, %91 : vector<32x32xi1>, vector<32x32xf32>
    %94 = arith.mulf %93, %52 : vector<32x32xf32>
    %95 = arith.addf %92, %94 : vector<32x32xf32>
    %96 = arith.truncf %95 : vector<32x32xf32> to vector<32x32xbf16>
    %97 = vector.shape_cast %96 : vector<32x32xbf16> to vector<2x16x32xbf16>
    %98 = arith.truncf %46 : vector<32x32xf32> to vector<32x32xbf16>
    %99 = vector.shape_cast %98 : vector<32x32xbf16> to vector<2x16x32xbf16>
    %100 = tpu.iota {dimensions = array<i32: 1>} : vector<16x16xi32>
    %c9_i32 = arith.constant 9 : i32
    %101 = vector.broadcast %c9_i32 : i32 to vector<16x16xi32>
    %102 = arith.cmpi slt, %100, %101 : vector<16x16xi32>
    %cst_36 = arith.constant 0.000000e+00 : f32
    %cst_37 = arith.constant -1.000000e+30 : f32
    %103 = vector.broadcast %cst_36 : f32 to vector<16x16xf32>
    %104 = vector.broadcast %cst_37 : f32 to vector<16x16xf32>
    %105 = arith.select %102, %103, %104 : vector<16x16xi1>, vector<16x16xf32>
    %106 = vector.extract_strided_slice %85 {offsets = [0, 0, 0], sizes = [2, 16, 8], strides = [1, 1, 1]} : vector<2x16x32xbf16> to vector<2x16x8xbf16>
    %107 = vector.extract_strided_slice %97 {offsets = [0, 0, 0], sizes = [2, 16, 8], strides = [1, 1, 1]} : vector<2x16x32xbf16> to vector<2x16x8xbf16>
    "tpu.trace_start"() <{level = 10 : i32, message = "btd,bsd->bts"}> : () -> ()
    %cst_38 = arith.constant dense<0.000000e+00> : vector<2x16x16xf32>
    %108 = tpu.matmul %106, %107, %cst_38 {dimension_numbers = #tpu.dot_dimension_numbers<[2], [2], [1], [1], [0, 0, 0, 1, 1, 1], [0], [0]>} : vector<2x16x8xbf16>, vector<2x16x8xbf16>, vector<2x16x16xf32> -> vector<2x16x16xf32>
    "tpu.trace_stop"() : () -> ()
    %109 = vector.shape_cast %105 : vector<16x16xf32> to vector<1x16x16xf32>
    %110 = vector.broadcast %109 : vector<1x16x16xf32> to vector<2x16x16xf32>
    %111 = arith.addf %108, %110 : vector<2x16x16xf32>
    %cst_39 = arith.constant dense<0xFF800000> : vector<2x16xf32>
    %112 = vector.multi_reduction <maximumf>, %111, %cst_39 [2] : vector<2x16x16xf32> to vector<2x16xf32>
    %113 = vector.shape_cast %112 : vector<2x16xf32> to vector<2x16x1xf32>
    %114 = vector.broadcast %113 : vector<2x16x1xf32> to vector<2x16x16xf32>
    %115 = arith.subf %111, %114 : vector<2x16x16xf32>
    %116 = math.exp %115 : vector<2x16x16xf32>
    %cst_40 = arith.constant dense<0.000000e+00> : vector<2x16xf32>
    %117 = vector.multi_reduction <add>, %116, %cst_40 [2] : vector<2x16x16xf32> to vector<2x16xf32>
    %118 = vector.shape_cast %117 : vector<2x16xf32> to vector<2x16x1xf32>
    %119 = tpu.reciprocal %118 {approx = true} : vector<2x16x1xf32> -> vector<2x16x1xf32>
    %120 = vector.broadcast %119 : vector<2x16x1xf32> to vector<2x16x16xf32>
    %121 = arith.mulf %116, %120 : vector<2x16x16xf32>
    %122 = arith.truncf %121 : vector<2x16x16xf32> to vector<2x16x16xbf16>
    %123 = vector.extract_strided_slice %99 {offsets = [0, 0, 0], sizes = [2, 16, 8], strides = [1, 1, 1]} : vector<2x16x32xbf16> to vector<2x16x8xbf16>
    "tpu.trace_start"() <{level = 10 : i32, message = "bts,bsd->btd"}> : () -> ()
    %cst_41 = arith.constant dense<0.000000e+00> : vector<2x16x8xf32>
    %124 = tpu.matmul %122, %123, %cst_41 {dimension_numbers = #tpu.dot_dimension_numbers<[2], [1], [1], [2], [0, 0, 0, 1, 1, 2], [0], [0]>} : vector<2x16x16xbf16>, vector<2x16x8xbf16>, vector<2x16x8xf32> -> vector<2x16x8xf32>
    "tpu.trace_stop"() : () -> ()
    %125 = vector.shape_cast %124 : vector<2x16x8xf32> to vector<32x8xf32>
    %c0_42 = arith.constant 0 : index
    %c0_43 = arith.constant 0 : index
    %126 = vector.load %arg17[%c0_42, %c0_43] : memref<32x32xf32, #tpu.memory_space<vmem>>, vector<32x8xf32>
    tpu.vector_store %arg17[%c0_42, %c0_43], %125 {strides = array<i32>} : memref<32x32xf32, #tpu.memory_space<vmem>>, vector<32x8xf32>,
    %127 = vector.extract_strided_slice %85 {offsets = [0, 0, 8], sizes = [2, 16, 8], strides = [1, 1, 1]} : vector<2x16x32xbf16> to vector<2x16x8xbf16>
    %128 = vector.extract_strided_slice %97 {offsets = [0, 0, 8], sizes = [2, 16, 8], strides = [1, 1, 1]} : vector<2x16x32xbf16> to vector<2x16x8xbf16>
    "tpu.trace_start"() <{level = 10 : i32, message = "btd,bsd->bts"}> : () -> ()
    %cst_44 = arith.constant dense<0.000000e+00> : vector<2x16x16xf32>
    %129 = tpu.matmul %127, %128, %cst_44 {dimension_numbers = #tpu.dot_dimension_numbers<[2], [2], [1], [1], [0, 0, 0, 1, 1, 1], [0], [0]>} : vector<2x16x8xbf16>, vector<2x16x8xbf16>, vector<2x16x16xf32> -> vector<2x16x16xf32>
    "tpu.trace_stop"() : () -> ()
    %130 = vector.shape_cast %105 : vector<16x16xf32> to vector<1x16x16xf32>
    %131 = vector.broadcast %130 : vector<1x16x16xf32> to vector<2x16x16xf32>
    %132 = arith.addf %129, %131 : vector<2x16x16xf32>
    %cst_45 = arith.constant dense<0xFF800000> : vector<2x16xf32>
    %133 = vector.multi_reduction <maximumf>, %132, %cst_45 [2] : vector<2x16x16xf32> to vector<2x16xf32>
    %134 = vector.shape_cast %133 : vector<2x16xf32> to vector<2x16x1xf32>
    %135 = vector.broadcast %134 : vector<2x16x1xf32> to vector<2x16x16xf32>
    %136 = arith.subf %132, %135 : vector<2x16x16xf32>
    %137 = math.exp %136 : vector<2x16x16xf32>
    %cst_46 = arith.constant dense<0.000000e+00> : vector<2x16xf32>
    %138 = vector.multi_reduction <add>, %137, %cst_46 [2] : vector<2x16x16xf32> to vector<2x16xf32>
    %139 = vector.shape_cast %138 : vector<2x16xf32> to vector<2x16x1xf32>
    %140 = tpu.reciprocal %139 {approx = true} : vector<2x16x1xf32> -> vector<2x16x1xf32>
    %141 = vector.broadcast %140 : vector<2x16x1xf32> to vector<2x16x16xf32>
    %142 = arith.mulf %137, %141 : vector<2x16x16xf32>
    %143 = arith.truncf %142 : vector<2x16x16xf32> to vector<2x16x16xbf16>
    %144 = vector.extract_strided_slice %99 {offsets = [0, 0, 8], sizes = [2, 16, 8], strides = [1, 1, 1]} : vector<2x16x32xbf16> to vector<2x16x8xbf16>
    "tpu.trace_start"() <{level = 10 : i32, message = "bts,bsd->btd"}> : () -> ()
    %cst_47 = arith.constant dense<0.000000e+00> : vector<2x16x8xf32>
    %145 = tpu.matmul %143, %144, %cst_47 {dimension_numbers = #tpu.dot_dimension_numbers<[2], [1], [1], [2], [0, 0, 0, 1, 1, 2], [0], [0]>} : vector<2x16x16xbf16>, vector<2x16x8xbf16>, vector<2x16x8xf32> -> vector<2x16x8xf32>
    "tpu.trace_stop"() : () -> ()
    %146 = vector.shape_cast %145 : vector<2x16x8xf32> to vector<32x8xf32>
    %c0_48 = arith.constant 0 : index
    %c8 = arith.constant 8 : index
    %147 = vector.load %arg17[%c0_48, %c8] : memref<32x32xf32, #tpu.memory_space<vmem>>, vector<32x8xf32>
    tpu.vector_store %arg17[%c0_48, %c8], %146 {strides = array<i32>} : memref<32x32xf32, #tpu.memory_space<vmem>>, vector<32x8xf32>,
    %148 = vector.extract_strided_slice %85 {offsets = [0, 0, 16], sizes = [2, 16, 8], strides = [1, 1, 1]} : vector<2x16x32xbf16> to vector<2x16x8xbf16>
    %149 = vector.extract_strided_slice %97 {offsets = [0, 0, 16], sizes = [2, 16, 8], strides = [1, 1, 1]} : vector<2x16x32xbf16> to vector<2x16x8xbf16>
    "tpu.trace_start"() <{level = 10 : i32, message = "btd,bsd->bts"}> : () -> ()
    %cst_49 = arith.constant dense<0.000000e+00> : vector<2x16x16xf32>
    %150 = tpu.matmul %148, %149, %cst_49 {dimension_numbers = #tpu.dot_dimension_numbers<[2], [2], [1], [1], [0, 0, 0, 1, 1, 1], [0], [0]>} : vector<2x16x8xbf16>, vector<2x16x8xbf16>, vector<2x16x16xf32> -> vector<2x16x16xf32>
    "tpu.trace_stop"() : () -> ()
    %151 = vector.shape_cast %105 : vector<16x16xf32> to vector<1x16x16xf32>
    %152 = vector.broadcast %151 : vector<1x16x16xf32> to vector<2x16x16xf32>
    %153 = arith.addf %150, %152 : vector<2x16x16xf32>
    %cst_50 = arith.constant dense<0xFF800000> : vector<2x16xf32>
    %154 = vector.multi_reduction <maximumf>, %153, %cst_50 [2] : vector<2x16x16xf32> to vector<2x16xf32>
    %155 = vector.shape_cast %154 : vector<2x16xf32> to vector<2x16x1xf32>
    %156 = vector.broadcast %155 : vector<2x16x1xf32> to vector<2x16x16xf32>
    %157 = arith.subf %153, %156 : vector<2x16x16xf32>
    %158 = math.exp %157 : vector<2x16x16xf32>
    %cst_51 = arith.constant dense<0.000000e+00> : vector<2x16xf32>
    %159 = vector.multi_reduction <add>, %158, %cst_51 [2] : vector<2x16x16xf32> to vector<2x16xf32>
    %160 = vector.shape_cast %159 : vector<2x16xf32> to vector<2x16x1xf32>
    %161 = tpu.reciprocal %160 {approx = true} : vector<2x16x1xf32> -> vector<2x16x1xf32>
    %162 = vector.broadcast %161 : vector<2x16x1xf32> to vector<2x16x16xf32>
    %163 = arith.mulf %158, %162 : vector<2x16x16xf32>
    %164 = arith.truncf %163 : vector<2x16x16xf32> to vector<2x16x16xbf16>
    %165 = vector.extract_strided_slice %99 {offsets = [0, 0, 16], sizes = [2, 16, 8], strides = [1, 1, 1]} : vector<2x16x32xbf16> to vector<2x16x8xbf16>
    "tpu.trace_start"() <{level = 10 : i32, message = "bts,bsd->btd"}> : () -> ()
    %cst_52 = arith.constant dense<0.000000e+00> : vector<2x16x8xf32>
    %166 = tpu.matmul %164, %165, %cst_52 {dimension_numbers = #tpu.dot_dimension_numbers<[2], [1], [1], [2], [0, 0, 0, 1, 1, 2], [0], [0]>} : vector<2x16x16xbf16>, vector<2x16x8xbf16>, vector<2x16x8xf32> -> vector<2x16x8xf32>
    "tpu.trace_stop"() : () -> ()
    %167 = vector.shape_cast %166 : vector<2x16x8xf32> to vector<32x8xf32>
    %c0_53 = arith.constant 0 : index
    %c16 = arith.constant 16 : index
    %168 = vector.load %arg17[%c0_53, %c16] : memref<32x32xf32, #tpu.memory_space<vmem>>, vector<32x8xf32>
    tpu.vector_store %arg17[%c0_53, %c16], %167 {strides = array<i32>} : memref<32x32xf32, #tpu.memory_space<vmem>>, vector<32x8xf32>,
    %169 = vector.extract_strided_slice %85 {offsets = [0, 0, 24], sizes = [2, 16, 8], strides = [1, 1, 1]} : vector<2x16x32xbf16> to vector<2x16x8xbf16>
    %170 = vector.extract_strided_slice %97 {offsets = [0, 0, 24], sizes = [2, 16, 8], strides = [1, 1, 1]} : vector<2x16x32xbf16> to vector<2x16x8xbf16>
    "tpu.trace_start"() <{level = 10 : i32, message = "btd,bsd->bts"}> : () -> ()
    %cst_54 = arith.constant dense<0.000000e+00> : vector<2x16x16xf32>
    %171 = tpu.matmul %169, %170, %cst_54 {dimension_numbers = #tpu.dot_dimension_numbers<[2], [2], [1], [1], [0, 0, 0, 1, 1, 1], [0], [0]>} : vector<2x16x8xbf16>, vector<2x16x8xbf16>, vector<2x16x16xf32> -> vector<2x16x16xf32>
    "tpu.trace_stop"() : () -> ()
    %172 = vector.shape_cast %105 : vector<16x16xf32> to vector<1x16x16xf32>
    %173 = vector.broadcast %172 : vector<1x16x16xf32> to vector<2x16x16xf32>
    %174 = arith.addf %171, %173 : vector<2x16x16xf32>
    %cst_55 = arith.constant dense<0xFF800000> : vector<2x16xf32>
    %175 = vector.multi_reduction <maximumf>, %174, %cst_55 [2] : vector<2x16x16xf32> to vector<2x16xf32>
    %176 = vector.shape_cast %175 : vector<2x16xf32> to vector<2x16x1xf32>
    %177 = vector.broadcast %176 : vector<2x16x1xf32> to vector<2x16x16xf32>
    %178 = arith.subf %174, %177 : vector<2x16x16xf32>
    %179 = math.exp %178 : vector<2x16x16xf32>
    %cst_56 = arith.constant dense<0.000000e+00> : vector<2x16xf32>
    %180 = vector.multi_reduction <add>, %179, %cst_56 [2] : vector<2x16x16xf32> to vector<2x16xf32>
    %181 = vector.shape_cast %180 : vector<2x16xf32> to vector<2x16x1xf32>
    %182 = tpu.reciprocal %181 {approx = true} : vector<2x16x1xf32> -> vector<2x16x1xf32>
    %183 = vector.broadcast %182 : vector<2x16x1xf32> to vector<2x16x16xf32>
    %184 = arith.mulf %179, %183 : vector<2x16x16xf32>
    %185 = arith.truncf %184 : vector<2x16x16xf32> to vector<2x16x16xbf16>
    %186 = vector.extract_strided_slice %99 {offsets = [0, 0, 24], sizes = [2, 16, 8], strides = [1, 1, 1]} : vector<2x16x32xbf16> to vector<2x16x8xbf16>
    "tpu.trace_start"() <{level = 10 : i32, message = "bts,bsd->btd"}> : () -> ()
    %cst_57 = arith.constant dense<0.000000e+00> : vector<2x16x8xf32>
    %187 = tpu.matmul %185, %186, %cst_57 {dimension_numbers = #tpu.dot_dimension_numbers<[2], [1], [1], [2], [0, 0, 0, 1, 1, 2], [0], [0]>} : vector<2x16x16xbf16>, vector<2x16x8xbf16>, vector<2x16x8xf32> -> vector<2x16x8xf32>
    "tpu.trace_stop"() : () -> ()
    %188 = vector.shape_cast %187 : vector<2x16x8xf32> to vector<32x8xf32>
    %c0_58 = arith.constant 0 : index
    %c24 = arith.constant 24 : index
    %189 = vector.load %arg17[%c0_58, %c24] : memref<32x32xf32, #tpu.memory_space<vmem>>, vector<32x8xf32>
    tpu.vector_store %arg17[%c0_58, %c24], %188 {strides = array<i32>} : memref<32x32xf32, #tpu.memory_space<vmem>>, vector<32x8xf32>,
    %c0_59 = arith.constant 0 : index
    %c0_60 = arith.constant 0 : index
    %190 = vector.load %arg17[%c0_59, %c0_60] : memref<32x32xf32, #tpu.memory_space<vmem>>, vector<32x32xf32>
    %191 = arith.addf %4, %190 : vector<32x32xf32>
    %c0_61 = arith.constant 0 : index
    %c0_62 = arith.constant 0 : index
    %c0_63 = arith.constant 0 : index
    %192 = vector.load %arg10[%c0_61, %c0_62, %c0_63] : memref<1x1x32xf32, #tpu.memory_space<vmem>>, vector<1x1x32xf32>
    %193 = vector.shape_cast %192 : vector<1x1x32xf32> to vector<1x32xf32>
    %c0_64 = arith.constant 0 : index
    %c0_65 = arith.constant 0 : index
    %c0_66 = arith.constant 0 : index
    %194 = vector.load %arg11[%c0_64, %c0_65, %c0_66] : memref<1x1x32xf32, #tpu.memory_space<vmem>>, vector<1x1x32xf32>
    %195 = vector.shape_cast %194 : vector<1x1x32xf32> to vector<1x32xf32>
    %cst_67 = arith.constant dense<0.000000e+00> : vector<32xf32>
    %196 = vector.multi_reduction <add>, %191, %cst_67 [1] : vector<32x32xf32> to vector<32xf32>
    %197 = vector.shape_cast %196 : vector<32xf32> to vector<32x1xf32>
    %cst_68 = arith.constant 3.200000e+01 : f32
    %198 = vector.broadcast %cst_68 : f32 to vector<32x1xf32>
    %199 = arith.divf %197, %198 : vector<32x1xf32>
    %200 = vector.broadcast %199 : vector<32x1xf32> to vector<32x32xf32>
    %201 = arith.subf %191, %200 : vector<32x32xf32>
    %202 = arith.mulf %201, %201 : vector<32x32xf32>
    %cst_69 = arith.constant dense<0.000000e+00> : vector<32xf32>
    %203 = vector.multi_reduction <add>, %202, %cst_69 [1] : vector<32x32xf32> to vector<32xf32>
    %204 = vector.shape_cast %203 : vector<32xf32> to vector<32x1xf32>
    %cst_70 = arith.constant 3.200000e+01 : f32
    %205 = vector.broadcast %cst_70 : f32 to vector<32x1xf32>
    %206 = arith.divf %204, %205 : vector<32x1xf32>
    %207 = vector.broadcast %199 : vector<32x1xf32> to vector<32x32xf32>
    %208 = arith.subf %191, %207 : vector<32x32xf32>
    %cst_71 = arith.constant 9.99999974E-6 : f32
    %209 = vector.broadcast %cst_71 : f32 to vector<32x1xf32>
    %210 = arith.addf %206, %209 : vector<32x1xf32>
    %211 = math.rsqrt %210 : vector<32x1xf32>
    %212 = vector.broadcast %211 : vector<32x1xf32> to vector<32x32xf32>
    %213 = arith.mulf %208, %212 : vector<32x32xf32>
    %214 = vector.broadcast %193 : vector<1x32xf32> to vector<32x32xf32>
    %215 = arith.mulf %213, %214 : vector<32x32xf32>
    %216 = vector.broadcast %195 : vector<1x32xf32> to vector<32x32xf32>
    %217 = arith.addf %215, %216 : vector<32x32xf32>
    %218 = arith.truncf %217 : vector<32x32xf32> to vector<32x32xbf16>
    %cst_72 = arith.constant 0.000000e+00 : f32
    %219 = vector.broadcast %cst_72 : f32 to vector<32x32xf32>
    %c0_73 = arith.constant 0 : index
    %c0_74 = arith.constant 0 : index
    %c0_75 = arith.constant 0 : index
    %220 = vector.load %arg12[%c0_73, %c0_74, %c0_75] : memref<1x32x64xbf16, #tpu.memory_space<vmem>>, vector<1x32x32xbf16>
    %221 = vector.shape_cast %220 : vector<1x32x32xbf16> to vector<32x32xbf16>
    %cst_76 = arith.constant dense<0.000000e+00> : vector<32x32xf32>
    %222 = tpu.matmul %218, %221, %cst_76 {dimension_numbers = #tpu.dot_dimension_numbers<[1], [0], [0], [1], [0, 0, 1, 1], [], []>} : vector<32x32xbf16>, vector<32x32xbf16>, vector<32x32xf32> -> vector<32x32xf32>
    %c0_77 = arith.constant 0 : index
    %c0_78 = arith.constant 0 : index
    %c0_79 = arith.constant 0 : index
    %223 = vector.load %arg13[%c0_77, %c0_78, %c0_79] : memref<1x1x64xf32, #tpu.memory_space<vmem>>, vector<1x1x32xf32>
    %224 = vector.shape_cast %223 : vector<1x1x32xf32> to vector<1x32xf32>
    %225 = vector.broadcast %224 : vector<1x32xf32> to vector<32x32xf32>
    %226 = arith.addf %222, %225 : vector<32x32xf32>
    %c0_80 = arith.constant 0 : index
    %c0_81 = arith.constant 0 : index
    %c32 = arith.constant 32 : index
    %227 = vector.load %arg12[%c0_80, %c0_81, %c32] : memref<1x32x64xbf16, #tpu.memory_space<vmem>>, vector<1x32x32xbf16>
    %228 = vector.shape_cast %227 : vector<1x32x32xbf16> to vector<32x32xbf16>
    %cst_82 = arith.constant dense<0.000000e+00> : vector<32x32xf32>
    %229 = tpu.matmul %218, %228, %cst_82 {dimension_numbers = #tpu.dot_dimension_numbers<[1], [0], [0], [1], [0, 0, 1, 1], [], []>} : vector<32x32xbf16>, vector<32x32xbf16>, vector<32x32xf32> -> vector<32x32xf32>
    %c0_83 = arith.constant 0 : index
    %c0_84 = arith.constant 0 : index
    %c32_85 = arith.constant 32 : index
    %230 = vector.load %arg13[%c0_83, %c0_84, %c32_85] : memref<1x1x64xf32, #tpu.memory_space<vmem>>, vector<1x1x32xf32>
    %231 = vector.shape_cast %230 : vector<1x1x32xf32> to vector<1x32xf32>
    %232 = vector.broadcast %231 : vector<1x32xf32> to vector<32x32xf32>
    %233 = arith.addf %229, %232 : vector<32x32xf32>
    %234 = arith.negf %233 : vector<32x32xf32>
    %235 = math.exp %234 : vector<32x32xf32>
    %cst_86 = arith.constant 1.000000e+00 : f32
    %236 = vector.broadcast %cst_86 : f32 to vector<32x32xf32>
    %237 = arith.addf %236, %235 : vector<32x32xf32>
    %238 = arith.divf %236, %237 : vector<32x32xf32>
    %239 = arith.mulf %233, %238 : vector<32x32xf32>
    %240 = arith.mulf %226, %239 : vector<32x32xf32>
    %241 = arith.truncf %240 : vector<32x32xf32> to vector<32x32xbf16>
    %c0_87 = arith.constant 0 : index
    %c0_88 = arith.constant 0 : index
    %c0_89 = arith.constant 0 : index
    %242 = vector.load %arg14[%c0_87, %c0_88, %c0_89] : memref<1x32x32xbf16, #tpu.memory_space<vmem>>, vector<1x32x32xbf16>
    %243 = vector.shape_cast %242 : vector<1x32x32xbf16> to vector<32x32xbf16>
    %cst_90 = arith.constant dense<0.000000e+00> : vector<32x32xf32>
    %244 = tpu.matmul %241, %243, %cst_90 {dimension_numbers = #tpu.dot_dimension_numbers<[1], [0], [0], [1], [0, 0, 1, 1], [], []>} : vector<32x32xbf16>, vector<32x32xbf16>, vector<32x32xf32> -> vector<32x32xf32>
    %245 = arith.addf %219, %244 : vector<32x32xf32>
    %246 = arith.addf %191, %245 : vector<32x32xf32>
    %c0_91 = arith.constant 0 : index
    %c0_92 = arith.constant 0 : index
    %c0_93 = arith.constant 0 : index
    %247 = vector.load %arg15[%c0_91, %c0_92, %c0_93] : memref<1x1x32xf32, #tpu.memory_space<vmem>>, vector<1x1x32xf32>
    %248 = vector.shape_cast %247 : vector<1x1x32xf32> to vector<1x32xf32>
    %249 = vector.broadcast %248 : vector<1x32xf32> to vector<32x32xf32>
    %250 = arith.addf %246, %249 : vector<32x32xf32>
    %251 = vector.shape_cast %250 : vector<32x32xf32> to vector<2x16x32xf32>
    %c0_94 = arith.constant 0 : index
    %c0_95 = arith.constant 0 : index
    %c0_96 = arith.constant 0 : index
    %252 = vector.load %arg16[%c0_94, %c0_95, %c0_96] : memref<2x16x32xf32, #tpu.memory_space<vmem>>, vector<2x16x32xf32>
    tpu.vector_store %arg16[%c0_94, %c0_95, %c0_96], %251 {strides = array<i32>} : memref<2x16x32xf32, #tpu.memory_space<vmem>>, vector<2x16x32xf32>,
    return
  }
  func.func @transform_0(%arg0: i32, %arg1: i32) -> (i32, i32, i32) {
    %c0_i32 = arith.constant 0 : i32
    %c0_i32_0 = arith.constant 0 : i32
    %c0_i32_1 = arith.constant 0 : i32
    return %arg0, %c0_i32, %c0_i32_0 : i32, i32, i32
  }
  func.func @transform_1(%arg0: i32, %arg1: i32) -> (i32, i32, i32) {
    %c0_i32 = arith.constant 0 : i32
    %c0_i32_0 = arith.constant 0 : i32
    %c0_i32_1 = arith.constant 0 : i32
    return %arg0, %c0_i32, %c0_i32_0 : i32, i32, i32
  }
  func.func @transform_2(%arg0: i32, %arg1: i32) -> (i32, i32, i32) {
    %c0_i32 = arith.constant 0 : i32
    %c0_i32_0 = arith.constant 0 : i32
    %c0_i32_1 = arith.constant 0 : i32
    return %arg0, %c0_i32, %c0_i32_0 : i32, i32, i32
  }
  func.func @transform_3(%arg0: i32, %arg1: i32) -> (i32, i32, i32) {
    %c0_i32 = arith.constant 0 : i32
    %c0_i32_0 = arith.constant 0 : i32
    %c0_i32_1 = arith.constant 0 : i32
    return %arg0, %c0_i32, %c0_i32_0 : i32, i32, i32
  }
  func.func @transform_4(%arg0: i32, %arg1: i32) -> (i32, i32, i32) {
    %c0_i32 = arith.constant 0 : i32
    %c0_i32_0 = arith.constant 0 : i32
    %c0_i32_1 = arith.constant 0 : i32
    return %arg1, %c0_i32, %c0_i32_0 : i32, i32, i32
  }
  func.func @transform_5(%arg0: i32, %arg1: i32) -> (i32, i32, i32) {
    %c0_i32 = arith.constant 0 : i32
    %c0_i32_0 = arith.constant 0 : i32
    %c0_i32_1 = arith.constant 0 : i32
    return %arg1, %c0_i32, %c0_i32_0 : i32, i32, i32
  }
  func.func @transform_6(%arg0: i32, %arg1: i32) -> (i32, i32, i32) {
    %c0_i32 = arith.constant 0 : i32
    %c0_i32_0 = arith.constant 0 : i32
    %c0_i32_1 = arith.constant 0 : i32
    return %arg1, %c0_i32, %c0_i32_0 : i32, i32, i32
  }
  func.func @transform_7(%arg0: i32, %arg1: i32) -> (i32, i32, i32) {
    %c0_i32 = arith.constant 0 : i32
    %c0_i32_0 = arith.constant 0 : i32
    %c0_i32_1 = arith.constant 0 : i32
    return %arg1, %c0_i32, %c0_i32_0 : i32, i32, i32
  }
  func.func @transform_8(%arg0: i32, %arg1: i32) -> (i32, i32, i32) {
    %c0_i32 = arith.constant 0 : i32
    %c0_i32_0 = arith.constant 0 : i32
    %c0_i32_1 = arith.constant 0 : i32
    return %arg1, %c0_i32, %c0_i32_0 : i32, i32, i32
  }
  func.func @transform_9(%arg0: i32, %arg1: i32) -> (i32, i32, i32) {
    %c0_i32 = arith.constant 0 : i32
    %c0_i32_0 = arith.constant 0 : i32
    %c0_i32_1 = arith.constant 0 : i32
    return %arg1, %c0_i32, %c0_i32_0 : i32, i32, i32
  }
  func.func @transform_10(%arg0: i32, %arg1: i32) -> (i32, i32, i32) {
    %c0_i32 = arith.constant 0 : i32
    %c0_i32_0 = arith.constant 0 : i32
    %c0_i32_1 = arith.constant 0 : i32
    return %arg1, %c0_i32, %c0_i32_0 : i32, i32, i32
  }
  func.func @transform_11(%arg0: i32, %arg1: i32) -> (i32, i32, i32) {
    %c0_i32 = arith.constant 0 : i32
    %c0_i32_0 = arith.constant 0 : i32
    %c0_i32_1 = arith.constant 0 : i32
    return %arg1, %c0_i32, %c0_i32_0 : i32, i32, i32
  }
  func.func @transform_12(%arg0: i32, %arg1: i32) -> (i32, i32, i32) {
    %c0_i32 = arith.constant 0 : i32
    %c0_i32_0 = arith.constant 0 : i32
    %c0_i32_1 = arith.constant 0 : i32
    return %arg1, %c0_i32, %c0_i32_0 : i32, i32, i32
  }
  func.func @transform_13(%arg0: i32, %arg1: i32) -> (i32, i32, i32) {
    %c0_i32 = arith.constant 0 : i32
    %c0_i32_0 = arith.constant 0 : i32
    %c0_i32_1 = arith.constant 0 : i32
    return %arg1, %c0_i32, %c0_i32_0 : i32, i32, i32
  }
  func.func @transform_14(%arg0: i32, %arg1: i32) -> (i32, i32, i32) {
    %c0_i32 = arith.constant 0 : i32
    %c0_i32_0 = arith.constant 0 : i32
    %c0_i32_1 = arith.constant 0 : i32
    return %arg0, %c0_i32, %c0_i32_0 : i32, i32, i32
  }
}

</mosaic_0001>

<bundles_post_ra>
// kernel: tpu_custom_call.1
= control target key start
LH: loop header
LB: loop body
LE: loop exit
PB: predicated region body
PF: predicated region fallthrough
CT: control target
= control target key end

     0   :  { %s4277_s0 = inlined_call_operand.hbm [shape: f32[2,16,32], index: 0, kind: input, shape index: {}]   ;;  %s4278_s1 = inlined_call_operand.vmem [shape: bf16[2,16,8], index: 1, kind: input, shape index: {}]   ;;  %s4279_s2 = inlined_call_operand.hbm [shape: bf16[2,16,32], index: 2, kind: input, shape index: {}]   ;;  %s4280_s3 = inlined_call_operand.hbm [shape: bf16[2,16,32], index: 3, kind: input, shape index: {}]   ;;  %s4281_s4 = inlined_call_operand.hbm [shape: bf16[2,8,64], index: 4, kind: input, shape index: {}]   ;;  %s4282_s5 = inlined_call_operand.hbm [shape: f32[2,1,32], index: 5, kind: input, shape index: {}]   ;;  %s4283_s6 = inlined_call_operand.hbm [shape: f32[2,1,32], index: 6, kind: input, shape index: {}]   ;;  %s4284_s7 = inlined_call_operand.hbm [shape: bf16[2,32,96], index: 7, kind: input, shape index: {}]   ;;  %s4285_s8 = inlined_call_operand.hbm [shape: f32[2,1,32], index: 8, kind: input, shape index: {}]   ;;  %s4286_s9 = inlined_call_operand.hbm [shape: f32[2,1,32], index: 9, kind: input, shape index: {}]   ;;  %s4287_s10 = inlined_call_operand.vmem [shape: bf16[2,32,64], index: 10, kind: input, shape index: {}]   ;;  %s4288_s11 = inlined_call_operand.vmem [shape: f32[2,1,64], index: 11, kind: input, shape index: {}]   ;;  %s4289_s12 = inlined_call_operand.hbm [shape: bf16[2,32,32], index: 12, kind: input, shape index: {}]   ;;  %s4290_s13 = inlined_call_operand.vmem [shape: f32[2,1,32], index: 13, kind: input, shape index: {}]   ;;  %s4291_s14 = inlined_call_operand.hbm [shape: f32[2,16,32], index: 14, kind: output, shape index: {}]  }
   0x1   :  { %4303 = sst [smem:[#allocation32_spill]] %s4277_s0 }
   0x2   :  { %4304 = sst [smem:[#allocation33_spill]] %s4278_s1 }
   0x3   :  { %4305 = sst [smem:[#allocation34_spill]] %s4279_s2 }
   0x4   :  { %4306 = sst [smem:[#allocation35_spill]] %s4280_s3 }
   0x5   :  { %4307 = sst [smem:[#allocation36_spill]] %s4281_s4 }
   0x6   :  { %4308 = sst [smem:[#allocation37_spill]] %s4282_s5 }
   0x7   :  { %4309 = sst [smem:[#allocation38_spill]] %s4283_s6 }
   0x8   :  { %4310 = sst [smem:[#allocation39_spill]] %s4284_s7 }
   0x9   :  { %4311 = sst [smem:[#allocation40_spill]] %s4285_s8 }
   0xa   :  { %4312 = sst [smem:[#allocation41_spill]] %s4287_s10 }
   0xb   :  { %4313 = sst [smem:[#allocation42_spill]] %s4288_s11 }
   0xc   :  { %4314 = sst [smem:[#allocation43_spill]] %s4290_s13 }
   0xd   :  { %4315 = sst [smem:[#allocation44_spill]] %s4291_s14 }
   0xe   :  { %19 = vsyncpa [#allocation4], 0 }
   0xf   :  { %20 = vsyncpa [#allocation7], 0 }
  0x10   :  { %21 = vsyncpa [#allocation10], 0 }
  0x11   :  { %23 = vsyncpa [#allocation10 + $0x1], 0 }
  0x12   :  { %24 = vsyncpa [#allocation13], 0 }
  0x13   :  { %26 = vsyncpa [#allocation13 + $0x1], 0 }
  0x14   :  { %27 = vsyncpa [#allocation16], 0 }
  0x15   :  { %29 = vsyncpa [#allocation16 + $0x1], 0 }
  0x16   :  { %30 = vsyncpa [#allocation19], 0 }
  0x17   :  { %32 = vsyncpa [#allocation19 + $0x1], 0 }
  0x18   :  { %33 = vsyncpa [#allocation5], 0  ;;  %s3453_s29 = smov 0   ;;  %s3455_s30 = smov 0  }
  0x19   :  { %s3457_s15 = smov 0   ;;  %s3459_s16 = smov 0  }
  0x1a   :  { %s3461_s17 = smov 0   ;;  %s3463_s18 = smov 0  }
  0x1b LB: > { %4316 = sst [smem:[#allocation28_spill]] %s3338_s16  ;;  %s3482_s19 = sadd.s32 4294967295, %s3346_s18   ;;  %s3346_s18 = sphi %s3463_s18, %s39_s18   ;;  %s3342_s17 = sphi %s3461_s17, %s4356_s17   ;;  %s3338_s16 = sphi %s3459_s16, %s4355_s16   ;;  %s3334_s15 = sphi %s3457_s15, %s4354_s15   ;;  %s3330_s30 = sphi %s3455_s30, %s4353_s30   ;;  %s3326_s29 = sphi %s3453_s29, %s4352_s29  }
  0x1c   : > { %4317 = sst [smem:[#allocation29_spill]] %s3346_s18  ;;  %p169_p0 = scmp.ne.s32.totalorder %s3334_s15, %s3330_s30 }
  0x1d   : > { %p170_p1 = scmp.eq.s32.totalorder %s3346_s18, 0  ;;  %p175_p2 = scmp.ne.s32.totalorder %s3330_s30, %s3326_s29 }
  0x1e   : > { %p176_p3 = scmp.eq.s32.totalorder %s3482_s19, 0  ;;  %p2556_p5 = scmp.ge.s32.totalorder %s3346_s18, 1 }
  0x1f   : > { %p3490_p4 = por %p170_p1, %p169_p0  ;;  %p446_p7 = scmp.lt.s32.totalorder %s3346_s18, 3 }
  0x20   : > { %p3497_p6 = por %p176_p3, %p175_p2  ;;  %s4320_s2 = sld [smem:[#allocation34_spill]] }
  0x21   : > { %p3505_p8 = pnand %p2556_p5, %p446_p7  ;;  %s3348_s27 = smov [#allocation6]  }
  0x22   : > { %s491_s28 = sshll.u32 %s3348_s27, 4  ;;  %p2742_p11 = scmp.lt.s32.totalorder %s3346_s18, 2  ;;  %s492_s28 = int_to_ptr.vmem [resolvable:$true] %s491_s28 }
  0x23   : > { %p2707_p9 = pneg %p3505_p8  ;;  %s4292_s23 = smov 64  }
  0x24   : > { %s4294_s24 = smov 4   ;;  %p3525_p12 = pnand %p2742_p11, %p3490_p4 }
  0x25   : > { %p3513_p10 = pnand %p2707_p9, %p176_p3  ;;  %s48_s20 = sadd.s32 1, %s3342_s17 }
  0x26   : > { %s489_s25 = sshll.u32 %s4320_s2, 4  ;;  %p49_p13 = scmp.ge.s32.totalorder %s48_s20, 2  ;;  %s490_s25 = int_to_ptr.hbm [resolvable:$true] %s489_s25 }
  0x27   : > { %2713 = dma.hbm_to_vmem [thread:$0]  (!%p3513_p10), %s490_s25, 256, %s492_s28, [#allocation7], %s4292_s23, %s4292_s23, %s4294_s24  }
  0x28   : > { %s3531_s2 = sand.u32 1, %s3346_s18   ;;  %s4358_s20 = smov (%p49_p13, %s48_s20), 0 }
  0x29   : > { %4324 = sst [smem:[#allocation30_spill]] %s4358_s20  ;;  %s3536_s14 = sand.u32 1, %s3334_s15  }
  0x2a   : > { %s2563_s21 = sshll.u32 %s3342_s17, 2  ;;  %s159_s25 = ssub.s32 %s3342_s17, %s4358_s20 }
  0x2b   : > { %s2562_s28 = sshll.u32 %s3536_s14, 2  ;;  %p160_p0 = scmp.eq.s32.totalorder %s159_s25, 0 }
  0x2c   : > { %s4325_s4 = sld [smem:[#allocation36_spill]]  ;;  %s527_s1 = scalar_lea.vmem [#allocation9], %s2562_s28 }
  0x2d   : > { %s535_s13 = sshll.u32 %s527_s1, 4  ;;  %s4326_s10 = sadd.s32 1, %s3334_s15  ;;  %s536_s13 = int_to_ptr.vmem [resolvable:$true] %s535_s13 }
  0x2e   : > { %s3548_s11 = scalar_select %p160_p0, %s3334_s15, %s4326_s10  }
  0x2f   : > { %s4300_s20 = scalar_lea.sflag [#allocation10], %s3531_s2  ;;  %s4328_s6 = sld [smem:[#allocation38_spill]] }
  0x30   : > { %4327 = sst [smem:[#allocation31_spill]] %s3548_s11  ;;  %s562_s1 = scalar_lea.vmem [#allocation12], %s3536_s14 }
  0x31   : > { %s569_s28 = sshll.u32 %s562_s1, 4  ;;  %s4301_s10 = scalar_lea.sflag [#allocation13], %s3531_s2  ;;  %s570_s28 = int_to_ptr.vmem [resolvable:$true] %s569_s28 }
  0x32   : > { %s531_s18 = scalar_lea.hbm %s4325_s4, %s2563_s21  ;;  %s4329_s8 = sld [smem:[#allocation40_spill]] }
  0x33   : > { %s533_s16 = sshll.u32 %s531_s18, 4  ;;  %s4302_s24 = scalar_lea.sflag [#allocation16], %s3531_s2  ;;  %s534_s16 = int_to_ptr.hbm [resolvable:$true] %s533_s16 }
  0x34   : > { %2720 = dma.hbm_to_vmem [thread:$0]  (!%p3525_p12), %s534_s16, 64, %s536_s13, %s4300_s20  }
  0x35   : > { %s565_s21 = scalar_lea.hbm %s4328_s6, %s3342_s17  ;;  %s601_s16 = scalar_lea.vmem [#allocation15], %s3536_s14 }
  0x36   : > { %s567_s25 = sshll.u32 %s565_s21, 4  ;;  %s608_s20 = sshll.u32 %s601_s16, 4  ;;  %s568_s25 = int_to_ptr.hbm [resolvable:$true] %s567_s25  ;;  %s609_s20 = int_to_ptr.vmem [resolvable:$true] %s608_s20 }
  0x37   : > { %2726 = dma.hbm_to_vmem [thread:$0]  (!%p3525_p12), %s568_s25, 16, %s570_s28, %s4301_s10  }
  0x38   : > { %s604_s13 = scalar_lea.hbm %s4329_s8, %s3342_s17  ;;  %s4330_s0 = sld [smem:[#allocation32_spill]] }
  0x39   : > { %s606_s23 = sshll.u32 %s604_s13, 4  ;;  %s3351_s4 = smov [#allocation3]   ;;  %s607_s23 = int_to_ptr.hbm [resolvable:$true] %s606_s23 }
  0x3a   : > { %2732 = dma.hbm_to_vmem [thread:$0]  (!%p3525_p12), %s607_s23, 16, %s609_s20, %s4302_s24  }
  0x3b   : > { %s463_s28 = sshll.u32 %s3351_s4, 4  ;;  %s3352_s18 = smov 128   ;;  %s464_s28 = int_to_ptr.vmem [resolvable:$true] %s463_s28 }
  0x3c   : > { %s3353_s13 = smov 8   ;;  %s4331_s3 = sld [smem:[#allocation35_spill]] }
  0x3d   : > { %s3354_s23 = smov [#allocation8]   ;;  %s4332_s1 = smov 4  }
  0x3e   : > { %s461_s25 = sshll.u32 %s4330_s0, 4  ;;  %s509_s21 = sshll.u32 %s3354_s23, 4  ;;  %s462_s25 = int_to_ptr.hbm [resolvable:$true] %s461_s25  ;;  %s510_s21 = int_to_ptr.vmem [resolvable:$true] %s509_s21 }
  0x3f   : > { %2710 = dma.hbm_to_vmem [thread:$0]  (!%p3513_p10), %s462_s25, 512, %s464_s28, [#allocation4], %s3352_s18, %s3352_s18, %s3353_s13  }
  0x40   : > { %s4333_s4 = smov 64   ;;  %s4334_s5 = sld [smem:[#allocation37_spill]] }
  0x41   : > { %s545_s25 = scalar_lea.vmem [#allocation11], %s3536_s14  ;;  %s2564_s18 = sshll.u32 %s3536_s14, 4 }
  0x42   : > { %s507_s20 = sshll.u32 %s4331_s3, 4  ;;  %s552_s10 = sshll.u32 %s545_s25, 4  ;;  %s508_s20 = int_to_ptr.hbm [resolvable:$true] %s507_s20  ;;  %s553_s10 = int_to_ptr.vmem [resolvable:$true] %s552_s10 }
  0x43   : > { %2716 = dma.hbm_to_vmem [thread:$0]  (!%p3513_p10), %s508_s20, 256, %s510_s21, [#allocation7], %s4333_s4, %s4333_s4, %s4332_s1  }
  0x44   : > { %s4335_s29 = scalar_lea.sflag [#allocation10], %s3531_s2  ;;  %s2646_s13 = sshll.u32 %s3342_s17, 4 }
  0x45   : > { %s4336_s7 = sld [smem:[#allocation39_spill]]  ;;  %s580_s24 = scalar_lea.vmem [#allocation14], %s2564_s18 }
  0x46   : > { %s548_s6 = scalar_lea.hbm %s4334_s5, %s3342_s17  ;;  %s588_s23 = sshll.u32 %s580_s24, 4  ;;  %s589_s23 = int_to_ptr.vmem [resolvable:$true] %s588_s23 }
  0x47   : > { %s550_s28 = sshll.u32 %s548_s6, 4  ;;  %s4337_s6 = scalar_lea.sflag [#allocation13], %s3531_s2  ;;  %s551_s28 = int_to_ptr.hbm [resolvable:$true] %s550_s28 }
  0x48   : > { %2723 = dma.hbm_to_vmem [thread:$0]  (!%p3525_p12), %s551_s28, 16, %s553_s10, %s4335_s29  }
  0x49   : > { %s621_s28 = scalar_lea.hbm %s4286_s9, %s3342_s17  ;;  %s618_s29 = scalar_lea.vmem [#allocation17], %s3536_s14 }
  0x4a   : > { %s625_s16 = sshll.u32 %s618_s29, 4  ;;  %s623_s20 = sshll.u32 %s621_s28, 4  ;;  %s626_s16 = int_to_ptr.vmem [resolvable:$true] %s625_s16  ;;  %s624_s20 = int_to_ptr.hbm [resolvable:$true] %s623_s20 }
  0x4b   : > { %s585_s0 = scalar_lea.hbm %s4336_s7, %s2646_s13  ;;  %s655_s5 = scalar_lea.hbm %s4289_s12, %s2646_s13 }
  0x4c   : > { %s586_s21 = sshll.u32 %s585_s0, 4  ;;  %s4338_s0 = scalar_lea.sflag [#allocation16], %s3531_s2  ;;  %s587_s21 = int_to_ptr.hbm [resolvable:$true] %s586_s21 }
  0x4d   : > { %2729 = dma.hbm_to_vmem [thread:$0]  (!%p3525_p12), %s587_s21, 256, %s589_s23, %s4337_s6, %s4333_s4, %s4333_s4, %s4332_s1  }
  0x4e   : > { %2735 = dma.hbm_to_vmem [thread:$0]  (!%p3525_p12), %s624_s20, 16, %s626_s16, %s4338_s0  }
  0x4f   : > { %s656_s7 = sshll.u32 %s655_s5, 4  ;;  %s650_s8 = scalar_lea.vmem [#allocation18], %s2564_s18  ;;  %s657_s7 = int_to_ptr.hbm [resolvable:$true] %s656_s7 }
  0x50   : > { %s658_s11 = sshll.u32 %s650_s8, 4  ;;  %s647_s23 = scalar_lea.sflag [#allocation19], %s3536_s14  ;;  %s659_s11 = int_to_ptr.vmem [resolvable:$true] %s658_s11 }
  0x51   : > { %2738 = dma.hbm_to_vmem [thread:$0]  (!%p3525_p12), %s657_s7, 256, %s659_s11, %s647_s23, %s4333_s4, %s4333_s4, %s4332_s1  }
  0x52   : > { %676 = sbr.rel (%p3505_p8) target bundleno = 2306 (0x902), region = 76 }
  0x57   : > { %3297 = dma.done.wait (%p176_p3), [#allocation4], 512  }
  0x58   : > { %3299 = vsyncadd (%p176_p3), [#allocation4], 4294966784 }
  0x59   : > { %3301 = dma.done.wait (%p176_p3), [#allocation7], 512  }
  0x5a   : > { %3303 = vsyncadd (%p176_p3), [#allocation7], 4294966784  ;;  %s693_s2 = sand.u32 1, %s3482_s19   ;;  %s3639_s3 = sand.u32 1, %s3330_s30  }
  0x5b   : > { %s2574_s5 = sshll.u32 %s3639_s3, 2  ;;  %s694_s7 = scalar_lea.sflag [#allocation10], %s693_s2 }
  0x5c   : > { %s3642_s8 = scalar_lea.vmem [#allocation9], %s2574_s5 }
  0x5d   : > { %3305 = dma.done.wait (%p3497_p6), %s694_s7, 80  }
  0x5e   : > { %3307 = vsyncadd (%p3497_p6), %s694_s7, 4294967216  ;;  %s706_s11 = scalar_lea.vmem [#allocation11], %s3639_s3  ;;  %s713_s14 = scalar_lea.sflag [#allocation13], %s693_s2 }
  0x5f   : > { %s715_s26 = scalar_lea.vmem [#allocation12], %s3639_s3 }
  0x60   : > { %3309 = dma.done.wait (%p3497_p6), %s713_s14, 272  }
  0x61   : > { %3311 = vsyncadd (%p3497_p6), %s713_s14, 4294967024  ;;  %s2575_s27 = sshll.u32 %s3639_s3, 4  ;;  %s732_s4 = scalar_lea.sflag [#allocation16], %s693_s2 }
  0x62   : > { %s3655_s1 = scalar_lea.vmem [#allocation14], %s2575_s27  ;;  %s734_s18 = scalar_lea.vmem [#allocation15], %s3639_s3 }
  0x63   : > { %3313 = dma.done.wait (%p3497_p6), %s732_s4, 32  }
  0x64   : > { %3315 = vsyncadd (%p3497_p6), %s732_s4, 4294967264  ;;  %s743_s13 = scalar_lea.vmem [#allocation17], %s3639_s3  ;;  %s750_s21 = scalar_lea.sflag [#allocation19], %s3639_s3 }
  0x65   : > { %s3664_s6 = scalar_lea.vmem [#allocation18], %s2575_s27 }
  0x66   : > { %3317 = dma.done.wait (%p3497_p6), %s750_s21, 256  }
  0x67   : > { %3319 = vsyncadd (%p3497_p6), %s750_s21, 4294967040  ;;  %s4339_s25 = sld [smem:[#allocation28_spill]] }
  0x68   : > { %s4340_s20 = sld [smem:[#allocation42_spill]] }
  0x69   : > { %s4341_s2 = sld [smem:[#allocation41_spill]] }
  0x6a   : > { %s4342_s14 = sld [smem:[#allocation43_spill]] }
  0x6d   : > { %p847_p1 = scmp.lt.s32.totalorder %s4339_s25, 1  ;;  %p2579_p2 = scmp.ne.s32.totalorder %s4339_s25, 0 }
  0x6f   : > { %s3672_s10 = scalar_select %p847_p1, %s4339_s25, 1 }
  0x70   : > { %863 = sbr.rel (%p2579_p2) target bundleno = 122 (0x7a), region = 120 }
  0x71   : > { %s2648_s28 = sshll.u32 %s3672_s10, 4  ;;  %s854_s0 = scalar_lea.vmem %s4340_s20, %s3672_s10 }
  0x72   : > { %s3682_s5 = scalar_lea.vmem %s4341_s2, %s2648_s28  ;;  %s857_s27 = scalar_lea.vmem %s4342_s14, %s3672_s10 }
  0x75   : > { %v864_v0 = vld [vmem:[#allocation3] sm:$0xff]  ;;  %vm868_vm0 = vcmask 261120   ;;  %v865_v1 = vld [vmem:[#allocation3 + $0x8] sm:$0xff]  ;;  %v866_v2 = vld [vmem:[#allocation3 + $0x10] sm:$0xff] }
  0x76   : > { %869 = vst.msk [vmem:[#allocation20] sm:$0xff] %vm868_vm0, %v864_v0  ;;  %v867_v3 = vld [vmem:[#allocation3 + $0x18] sm:$0xff] }
  0x77   : > { %870 = vst.msk [vmem:[#allocation20 + $0x8] sm:$0xff] %vm868_vm0, %v865_v1 }
  0x78   : > { %871 = vst.msk [vmem:[#allocation20 + $0x10] sm:$0xff] %vm868_vm0, %v866_v2 }
  0x79   : > { %872 = vst.msk [vmem:[#allocation20 + $0x18] sm:$0xff] %vm868_vm0, %v867_v3 }
  0x7a PF: > { %vm879_vm1 = vcmask 261120   ;;  %v3355_v12 = vmov 32.0   ;;  %v1036_v39 = vld [vmem:[%s3642_s8] sm:$0xf]  ;;  %vm1054_vm3 = vcmask 1043456   ;;  %s4343_s25 = sld [smem:[#allocation33_spill]] }
  0x7b   : > { %2842 = vrcp.f32 %v3355_v12  ;;  %v1056_v40 = vsel %vm1054_vm3, %v1036_v39, 0  ;;  %vm1047_vm4 = vcmask 64512   ;;  %v2650_v42 = vld [vmem:[%s3655_s1 + $0x8] sm:$0xff]  ;;  %v2649_v47 = vld [vmem:[%s3655_s1] sm:$0xff]  ;;  %s3358_s1 = smov 95   ;;  %s3359_s29 = smov 32  }
  0x7c   : > { %1065 = vmatpush.bf16.msra.mxu1 %v1056_v40  ;;  %1019 = vmatpush.bf16.msra.mxu0 %v2650_v42  ;;  %s3360_s16 = smov 127   ;;  %s3361_s20 = smov 1  }
  0x7d   : > { %v873_v5 = vld [vmem:[#allocation20] sm:$0xff]  ;;  %2675 = vmatpush.bf16.msra.mxu3 %v2650_v42  ;;  %s3362_s24 = smov 88   ;;  %s3363_s23 = smov 80  }
  0x7e   : > { %v880_v7 = vsel %vm879_vm1, %v873_v5, 0.0  ;;  %v874_v9 = vld [vmem:[#allocation20 + $0x8] sm:$0xff]  ;;  %s3364_s2 = smov 104   ;;  %s3365_s22 = smov 120  }
  0x7f   : > { %v875_v4 = vld [vmem:[#allocation20 + $0x10] sm:$0xff]  ;;  %881 = vadd.xlane.f32.xlu0 %v880_v7  ;;  %v883_v11 = vsel %vm879_vm1, %v874_v9, 0.0  ;;  %s3366_s7 = smov 112   ;;  %s3367_s14 = smov 64  }
  0x80   : > { %v886_v6 = vsel %vm879_vm1, %v875_v4, 0.0  ;;  %v876_v8 = vld [vmem:[#allocation20 + $0x18] sm:$0xff]  ;;  %v2651_v41 = vld [vmem:[%s4343_s25] sm:$0xff]  ;;  %1020 = vmatpush.bf16.msra.mxu0 %v2649_v47  ;;  %s3368_s4 = smov 56   ;;  %s3369_s21 = smov 72  }
  0x81   : > { %887 = vadd.xlane.f32.xlu1 %v886_v6  ;;  %v889_v10 = vsel %vm879_vm1, %v876_v8, 0.0  ;;  %v2843_v13 = vpop.eup %2842  ;;  %2598 = vmatmul.msk.bf16.vlgmr.msra.gmra.mxu1 %vm1047_vm4, %v2651_v41  ;;  %v2652_v50 = vld [vmem:[%s4343_s25 + $0x8] sm:$0xff]  ;;  %s3371_s8 = smov 48   ;;  %s3372_s28 = smov 40  }
  0x82   : > { %v893_v14 = vmul.f32 32.0, %v2843_v13  ;;  %vm897_vm2 = vweird.f32 %v2843_v13  ;;  %2676 = vmatpush.bf16.msra.mxu3 %v2649_v47  ;;  %s3376_s10 = smov [#allocation20]   ;;  %p2746_p3 = scmp.eq.s32.totalorder %s3482_s19, 1 }
  0x84   : > { %v894_v15 = vsub.f32 1.0, %v893_v14 }
  0x86   : > { %v895_v16 = vmul.f32 %v2843_v13, %v894_v15 }
  0x87   : > { %884 = vadd.xlane.f32.xlu0 %v883_v11 }
  0x88   : > { %v896_v17 = vadd.f32 %v2843_v13, %v895_v16 }
  0x89   : > { %890 = vadd.xlane.f32.xlu1 %v889_v10 }
  0x8a   : > { %v3693_v18 = vsel %vm897_vm2, %v2843_v13, %v896_v17  ;;  %vm1128_vm2 = vcmask 252928  }
  0x91   : > { %2599 = vmatmul.msk.bf16.gmra.mxu1 %vm1047_vm4, %v2652_v50  ;;  %v3773_v50 = vld [vmem:[#allocation6] sm:$0xff]  }
  0xf2   : > { %v882_v20 = vpop.xlane.xlu0 %881 }
  0xf3   : > { %v899_v22 = vmul.f32 %v3693_v18, %v882_v20 }
  0xf4   : > { %v888_v19 = vpop.xlane.xlu1 %887 }
  0xf5   : > { %v901_v21 = vmul.f32 %v3693_v18, %v888_v19  ;;  %v3699_v24 = vsub.f32 %v873_v5, %v899_v22  ;;  %v2836_v19 = vld [vmem:[%s706_s11] ss:$0 sm:$0xff]  ;;  %s3356_s11 = smov 97  }
  0xf7   : > { %v3697_v23 = vsub.f32 %v875_v4, %v901_v21  ;;  %v907_v26 = vmul.f32 %v3699_v24, %v3699_v24 }
  0xf9   : > { %v909_v25 = vmul.f32 %v3697_v23, %v3697_v23  ;;  %v911_v28 = vsel %vm879_vm1, %v907_v26, 0.0 }
  0xfa   : > { %912 = vadd.xlane.f32.xlu2 %v911_v28  ;;  %v885_v30 = vpop.xlane.xlu0 %884  ;;  %v2837_v28 = vld [vmem:[%s715_s26] ss:$0 sm:$0xff]  ;;  %s3357_s26 = smov 96  }
  0xfb   : > { %v917_v27 = vsel %vm879_vm1, %v909_v25, 0.0  ;;  %v900_v32 = vmul.f32 %v3693_v18, %v885_v30 }
  0xfc   : > { %v891_v29 = vpop.xlane.xlu1 %890  ;;  %918 = vadd.xlane.f32.xlu0 %v917_v27 }
  0xfd   : > { %v902_v31 = vmul.f32 %v3693_v18, %v891_v29  ;;  %v3711_v34 = vsub.f32 %v874_v9, %v900_v32 }
  0xff   : > { %v3709_v33 = vsub.f32 %v876_v8, %v902_v31  ;;  %v908_v36 = vmul.f32 %v3711_v34, %v3711_v34 }
 0x101   : > { %v910_v35 = vmul.f32 %v3709_v33, %v3709_v33  ;;  %v914_v38 = vsel %vm879_vm1, %v908_v36, 0.0 }
 0x102   : > { %915 = vadd.xlane.f32.xlu2 %v914_v38 }
 0x103   : > { %v920_v37 = vsel %vm879_vm1, %v910_v35, 0.0 }
 0x104   : > { %921 = vadd.xlane.f32.xlu1 %v920_v37 }
 0x16d   : > { %v913_v43 = vpop.xlane.xlu2 %912 }
 0x16e   : > { %v923_v45 = vmul.f32 %v913_v43, %v3693_v18 }
 0x16f   : > { %v919_v44 = vpop.xlane.xlu0 %918 }
 0x170   : > { %v925_v46 = vmul.f32 %v919_v44, %v3693_v18  ;;  %v927_v48 = vadd.f32 1e-05, %v923_v45 }
 0x172   : > { %v929_v49 = vadd.f32 1e-05, %v925_v46  ;;  %2844 = vrsqrt.f32 %v927_v48  ;;  %vm937_vm8 = vweird.f32 %v927_v48 }
 0x174   : > { %2846 = vrsqrt.f32 %v929_v49  ;;  %vm957_vm7 = vweird.f32 %v929_v49 }
 0x175   : > { %v916_v52 = vpop.xlane.xlu2 %915 }
 0x176   : > { %v924_v54 = vmul.f32 %v916_v52, %v3693_v18  ;;  %v2660_v52 = vunpack.c.h.bf16 %v3773_v50 }
 0x177   : > { %v922_v51 = vpop.xlane.xlu1 %921 }
 0x178   : > { %v926_v53 = vmul.f32 %v922_v51, %v3693_v18  ;;  %v2845_v55 = vpop.eup %2844  ;;  %v928_v57 = vadd.f32 1e-05, %v924_v54  ;;  %v2659_v51 = vunpack.c.l.bf16 %v3773_v50  ;;  %v3786_v54 = vld [vmem:[#allocation6 + $0x8] sm:$0xff]  }
 0x179   : > { %v932_v59 = vmul.f32 %v2845_v55, %v927_v48  ;;  %vm938_vm6 = vweird.f32 %v2845_v55 }
 0x17a   : > { %v930_v56 = vadd.f32 1e-05, %v926_v53  ;;  %v2847_v58 = vpop.eup %2846  ;;  %vm939_vm10 = vmor %vm937_vm8, %vm938_vm6  ;;  %vm947_vm15 = vweird.f32 %v928_v57  ;;  %v2826_v53 = vpack.i.bf16 %v2660_v52, %v2659_v51  ;;  %vm1615_vm8 = vcmask 130112  }
 0x17b   : > { %v952_v60 = vmul.f32 %v2847_v58, %v929_v49  ;;  %v933_v61 = vmul.f32 %v2845_v55, %v932_v59  ;;  %vm958_vm5 = vweird.f32 %v2847_v58 }
 0x17c   : > { %2848 = vrsqrt.f32 %v930_v56  ;;  %vm959_vm9 = vmor %vm957_vm7, %vm958_vm5  ;;  %vm967_vm13 = vweird.f32 %v930_v56  ;;  %vm1145_vm5 = vcmask 7168   ;;  %vm1340_vm7 = vcmask 130048  }
 0x17d   : > { %2850 = vrsqrt.f32 %v928_v57  ;;  %v953_v62 = vmul.f32 %v2847_v58, %v952_v60  ;;  %v934_v63 = vmul.f32 0.5, %v933_v61  ;;  %v1097_v60 = vlaneseq }
 0x17f   : > { %v954_v0 = vmul.f32 0.5, %v953_v62  ;;  %v935_v1 = vsub.f32 1.5, %v934_v63  ;;  %v3808_v61 = vand.u32 127, %v1097_v60 }
 0x181   : > { %v955_v3 = vsub.f32 1.5, %v954_v0  ;;  %v936_v6 = vmul.f32 %v2845_v55, %v935_v1  ;;  %v1103_v63 = vand.u32 1, %v3808_v61  ;;  %v3811_v0 = vld [vmem:[#allocation8] sm:$0xff]   ;;  %vm1274_vm6 = vcmp.lt.s32.totalorder %v3808_v61, 9 }
 0x182   : > { %v2849_v2 = vpop.eup %2848 }
 0x183   : > { %v2851_v4 = vpop.eup %2850  ;;  %v962_v5 = vmul.f32 %v2849_v2, %v930_v56  ;;  %v956_v7 = vmul.f32 %v2847_v58, %v955_v3  ;;  %v940_v13 = vsel %vm939_vm10, %v2845_v55, %v936_v6  ;;  %vm968_vm11 = vweird.f32 %v2849_v2 }
 0x184   : > { %v942_v8 = vmul.f32 %v2851_v4, %v928_v57  ;;  %vm948_vm12 = vweird.f32 %v2851_v4  ;;  %v971_v20 = vmul.f32 %v940_v13, %v3699_v24  ;;  %vm969_vm14 = vmor %vm967_vm13, %vm968_vm11  ;;  %v2663_v55 = vunpack.c.l.bf16 %v3786_v54 }
 0x185   : > { %v963_v9 = vmul.f32 %v2849_v2, %v962_v5  ;;  %v960_v11 = vsel %vm959_vm9, %v2847_v58, %v956_v7  ;;  %vm949_vm0 = vmor %vm947_vm15, %vm948_vm12  ;;  %v2664_v56 = vunpack.c.h.bf16 %v3786_v54  ;;  %vm3813_vm3 = vcmp.eq.s32.totalorder %v1103_v63, 0 }
 0x186   : > { %v943_v10 = vmul.f32 %v2851_v4, %v942_v8  ;;  %v973_v16 = vmul.f32 %v960_v11, %v3697_v23  ;;  %v978_v30 = vmul.f32 %v2836_v19, %v971_v20  ;;  %vm1949_vm9 = vcmask 261312  }
 0x187   : > { %v964_v12 = vmul.f32 0.5, %v963_v9  ;;  %v2831_v57 = vpack.i.bf16 %v2664_v56, %v2663_v55 }
 0x188   : > { %v944_v14 = vmul.f32 0.5, %v943_v10  ;;  %v980_v29 = vmul.f32 %v2836_v19, %v973_v16  ;;  %v985_v36 = vadd.f32 %v2837_v28, %v978_v30  ;;  %v2668_v10 = vunpack.c.h.bf16 %v3811_v0 }
 0x189   : > { %v965_v15 = vsub.f32 1.5, %v964_v12 }
 0x18a   : > { %v945_v17 = vsub.f32 1.5, %v944_v14  ;;  %v987_v35 = vadd.f32 %v2837_v28, %v980_v29 }
 0x18b   : > { %v966_v21 = vmul.f32 %v2849_v2, %v965_v15 }
 0x18c   : > { %v946_v22 = vmul.f32 %v2851_v4, %v945_v17  ;;  %v3832_v17 = vld [vmem:[#allocation8 + $0x8] sm:$0xff]  }
 0x18d   : > { %v970_v25 = vsel %vm969_vm14, %v2849_v2, %v966_v21  ;;  %v2667_v2 = vunpack.c.l.bf16 %v3811_v0  ;;  %v2672_v20 = vunpack.c.h.bf16 %v3832_v17  ;;  %v2671_v29 = vunpack.c.l.bf16 %v3832_v17 }
 0x18e   : > { %v974_v26 = vmul.f32 %v970_v25, %v3709_v33  ;;  %v950_v27 = vsel %vm949_vm0, %v2851_v4, %v946_v22  ;;  %v1067_v33 = vpop.f32.mrf.mxu1 }
 0x18f   : > { %v972_v23 = vmul.f32 %v950_v27, %v3711_v34 }
 0x190   : > { %v981_v31 = vmul.f32 %v2836_v19, %v974_v26 }
 0x191   : > { %v979_v32 = vmul.f32 %v2836_v19, %v972_v23 }
 0x192   : > { %v988_v24 = vadd.f32 %v2837_v28, %v981_v31 }
 0x193   : > { %v986_v37 = vadd.f32 %v2837_v28, %v979_v32 }
 0x194   : > { %v990_v38 = vpack.c.bf16 %v988_v24, %v987_v35 }
 0x195   : > { %v989_v39 = vpack.c.bf16 %v986_v37, %v985_v36 }
 0x196   : > { %2589 = vmatmul.msk.bf16.vlgmr.msra.gmra.mxu3 %vm879_vm1, %v990_v38  ;;  %v1069_v40 = vpop.f32.mrf.mxu1 }
 0x197   : > { %2588 = vmatmul.msk.bf16.vlgmr.msra.gmra.mxu0 %vm879_vm1, %v989_v39 }
 0x19e   : > { %v1072_v43 = vpop.f32.mrf.mxu1 }
 0x1a6   : > { %v1074_v48 = vpop.f32.mrf.mxu1 }
 0x214   : > { %v3744_v41 = vpop.f32.mrf.mxu0 }
 0x215   : > { %v3747_v42 = vadd.f32 %v1067_v33, %v3744_v41 }
 0x217   : > { %1202 = vrot.lane.b32.xlu0 %v3747_v42, %s3356_s11  ;;  %1186 = vrot.lane.b32.xlu1 %v3747_v42, %s3357_s26 }
 0x218   : > { %1174 = vrot.lane.b32.xlu2 %v3747_v42, %s3358_s1 }
 0x219   : > { %v3754_v34 = vpop.f32.mrf.mxu3 }
 0x21a   : > { %v3759_v45 = vadd.f32 %v1072_v43, %v3754_v34  ;;  %v1272_v54 = vpack.c.bf16 %v3754_v34, %v3754_v34 }
 0x21c   : > { %v3756_v44 = vpop.f32.mrf.mxu0  ;;  %v1426_v17 = vunpack.c.l.b16 %v1272_v54 }
 0x21d   : > { %v3762_v46 = vadd.f32 %v1069_v40, %v3756_v44 }
 0x21f   : > { %1176 = vrot.lane.b32.xlu0 %v3762_v46, %s3358_s1  ;;  %1178 = vrot.lane.b32.xlu1 %v3759_v45, %s3358_s1 }
 0x220   : > { %1188 = vrot.lane.b32.xlu2 %v3762_v46, %s3357_s26 }
 0x221   : > { %v3768_v47 = vpop.f32.mrf.mxu3 }
 0x222   : > { %v3771_v49 = vadd.f32 %v1074_v48, %v3768_v47 }
 0x227   : > { %1192 = vrot.lane.b32.xlu1 %v3771_v49, %s3357_s26  ;;  %1180 = vrot.lane.b32.xlu0 %v3771_v49, %s3358_s1  ;;  %s3374_s1 = smov 16  }
 0x228   : > { %1204 = vrot.lane.b32.xlu2 %v3762_v46, %s3356_s11 }
 0x22f   : > { %2827 = vrot.lane.b32.xlu1 %v2826_v53, %s3359_s29  ;;  %1206 = vrot.lane.b32.xlu0 %v3759_v45, %s3356_s11 }
 0x230   : > { %1190 = vrot.lane.b32.xlu2 %v3759_v45, %s3357_s26 }
 0x237   : > { %2832 = vrot.lane.b32.xlu1 %v2831_v57, %s3359_s29 }
 0x238   : > { %1208 = vrot.lane.b32.xlu2 %v3771_v49, %s3356_s11  ;;  %s3373_s11 = smov 8  }
 0x23f   : > { %1116 = vrot.lane.b32.xlu1 %v3747_v42, %s3360_s16 }
 0x247   : > { %1135 = vrot.lane.b32.xlu1 %v3762_v46, %s3361_s20 }
 0x24f   : > { %1137 = vrot.lane.b32.xlu1 %v3759_v45, %s3361_s20 }
 0x272   : > { %v1175_v58 = vpop.permute.xlu2 %1174 }
 0x27a   : > { %v1189_v59 = vpop.permute.xlu2 %1188 }
 0x282   : > { %v1205_v62 = vpop.permute.xlu2 %1204 }
 0x283   : > { %v1215_v13 = vsel %vm1145_vm5, %v1189_v59, %v1205_v62 }
 0x289   : > { %v1187_v3 = vpop.permute.xlu1 %1186  ;;  %v1203_v4 = vpop.permute.xlu0 %1202 }
 0x28a   : > { %v1198_v5 = vsel %vm1128_vm2, %v1175_v58, %v1187_v3  ;;  %v1214_v6 = vsel %vm1145_vm5, %v1187_v3, %v1203_v4  ;;  %v1191_v9 = vpop.permute.xlu2 %1190 }
 0x28b   : > { %v1238_v7 = vsel %vm3813_vm3, %v1198_v5, %v1214_v6 }
 0x28c   : > { %v1242_v8 = vmul.f32 %v2667_v2, %v1238_v7 }
 0x28e   : > { %1250 = vrot.lane.b32.xlu0 %v1242_v8, %s3359_s29 }
 0x291   : > { %v1179_v11 = vpop.permute.xlu1 %1178  ;;  %v1177_v12 = vpop.permute.xlu0 %1176 }
 0x292   : > { %v1199_v14 = vsel %vm1128_vm2, %v1177_v12, %v1189_v59  ;;  %v1209_v19 = vpop.permute.xlu2 %1208  ;;  %v1200_v30 = vsel %vm1128_vm2, %v1179_v11, %v1191_v9 }
 0x293   : > { %v1239_v15 = vsel %vm3813_vm3, %v1199_v14, %v1215_v13 }
 0x294   : > { %v1243_v16 = vmul.f32 %v2668_v10, %v1239_v15 }
 0x296   : > { %1252 = vrot.lane.b32.xlu2 %v1243_v16, %s3359_s29 }
 0x299   : > { %v1193_v21 = vpop.permute.xlu1 %1192  ;;  %v1181_v22 = vpop.permute.xlu0 %1180 }
 0x29a   : > { %v1217_v25 = vsel %vm1145_vm5, %v1193_v21, %v1209_v19  ;;  %v1201_v26 = vsel %vm1128_vm2, %v1181_v22, %v1193_v21 }
 0x29b   : > { %v1241_v27 = vsel %vm3813_vm3, %v1201_v26, %v1217_v25  ;;  %v1150_v25 = vmul.f32 %v2659_v51, %v3747_v42  ;;  %v1151_v51 = vmul.f32 %v2660_v52, %v3762_v46 }
 0x29c   : > { %v1245_v28 = vmul.f32 %v2672_v20, %v1241_v27 }
 0x29e   : > { %1256 = vrot.lane.b32.xlu2 %v1245_v28, %s3359_s29 }
 0x2a1   : > { %v1207_v23 = vpop.permute.xlu0 %1206  ;;  %v2828_v24 = vpop.permute.xlu1 %2827 }
 0x2a2   : > { %v1216_v31 = vsel %vm1145_vm5, %v1191_v9, %v1207_v23  ;;  %v2830_v36 = vunpack.i.h.bf16 %v2828_v24  ;;  %v2829_v38 = vunpack.i.l.bf16 %v2828_v24 }
 0x2a3   : > { %v1240_v32 = vsel %vm3813_vm3, %v1200_v30, %v1216_v31 }
 0x2a4   : > { %v1244_v35 = vmul.f32 %v2671_v29, %v1240_v32  ;;  %v1235_v39 = vmul.f32 %v2830_v36, %v3762_v46  ;;  %v1234_v40 = vmul.f32 %v2829_v38, %v3747_v42 }
 0x2a6   : > { %1133 = vrot.lane.b32.xlu2 %v3747_v42, %s3361_s20  ;;  %1254 = vrot.lane.b32.xlu0 %v1244_v35, %s3359_s29  ;;  %s3375_s29 = smov 24  }
 0x2a9   : > { %v2833_v62 = vpop.permute.xlu1 %2832 }
 0x2aa   : > { %v2835_v3 = vunpack.i.h.bf16 %v2833_v62  ;;  %v2834_v6 = vunpack.i.l.bf16 %v2833_v62 }
 0x2ac   : > { %v1237_v7 = vmul.f32 %v2835_v3, %v3771_v49  ;;  %v1236_v12 = vmul.f32 %v2834_v6, %v3759_v45 }
 0x2ae   : > { %1122 = vrot.lane.b32.xlu2 %v3771_v49, %s3360_s16  ;;  %1118 = vrot.lane.b32.xlu0 %v3762_v46, %s3360_s16 }
 0x2b1   : > { %v1117_v4 = vpop.permute.xlu1 %1116 }
 0x2b2   : > { %v1129_v11 = vsel %vm1128_vm2, %v1117_v4, %v3747_v42 }
 0x2b6   : > { %1120 = vrot.lane.b32.xlu0 %v3759_v45, %s3360_s16 }
 0x2b9   : > { %v1136_v22 = vpop.permute.xlu1 %1135 }
 0x2ba   : > { %v1147_v31 = vsel %vm1145_vm5, %v3762_v46, %v1136_v22 }
 0x2be   : > { %1139 = vrot.lane.b32.xlu0 %v3771_v49, %s3361_s20  ;;  %s4348_s20 = sld [smem:[#allocation44_spill]] }
 0x2c1   : > { %v1138_v36 = vpop.permute.xlu1 %1137 }
 0x2f0   : > { %v1253_v37 = vpop.permute.xlu2 %1252 }
 0x2f1   : > { %v1263_v33 = vadd.f32 %v1253_v37, %v1235_v39 }
 0x2f3   : > { %v1267_v48 = vpack.c.bf16 %v1263_v33, %v1263_v33  ;;  %v1148_v33 = vsel %vm1145_vm5, %v3759_v45, %v1138_v36 }
 0x2f5   : > { %v1284_v58 = vunpack.c.l.b16 %v1267_v48  ;;  %v1152_v48 = vmul.f32 %v2663_v55, %v3759_v45 }
 0x2f8   : > { %v1257_v63 = vpop.permute.xlu2 %1256 }
 0x2f9   : > { %v1265_v8 = vadd.f32 %v1257_v63, %v1237_v7 }
 0x2fb   : > { %v1269_v15 = vpack.c.bf16 %v1265_v8, %v1265_v8 }
 0x2fd   : > { %v1316_v26 = vunpack.c.l.b16 %v1269_v15 }
 0x300   : > { %v1251_v43 = vpop.permute.xlu0 %1250  ;;  %v1134_v5 = vpop.permute.xlu2 %1133 }
 0x301   : > { %v1262_v53 = vadd.f32 %v1251_v43, %v1234_v40  ;;  %v1146_v9 = vsel %vm1145_vm5, %v3747_v42, %v1134_v5 }
 0x302   : > { %v1154_v13 = vsel %vm3813_vm3, %v1129_v11, %v1146_v9 }
 0x303   : > { %v1266_v57 = vpack.c.bf16 %v1262_v53, %v1262_v53  ;;  %v1158_v19 = vmul.f32 %v2667_v2, %v1154_v13 }
 0x305   : > { %v1283_v59 = vunpack.c.l.b16 %v1266_v57  ;;  %v1162_v28 = vadd.f32 %v1158_v19, %v1150_v25 }
 0x307   : > { %v3863_v60 = vpack.c.b16 %v1284_v58, %v1283_v59  ;;  %v1166_v2 = vmul.f32 0.35355338, %v1162_v28  ;;  %v1270_v58 = vpack.c.bf16 %v3744_v41, %v3744_v41  ;;  %v1153_v41 = vmul.f32 %v2664_v56, %v3771_v49 }
 0x308   : > { %v1123_v57 = vpop.permute.xlu2 %1122 }
 0x309   : > { %1455 = vrot.lane.b32.xlu0 %v3863_v60, %s3362_s24  ;;  %1286 = vrot.lane.b32.xlu2 %v3863_v60, %s3357_s26  ;;  %v1170_v37 = vpack.c.bf16 %v1166_v2, %v1166_v2  ;;  %v1396_v55 = vunpack.c.l.b16 %v1270_v58 }
 0x30b   : > { %v1278_v50 = vunpack.c.l.b16 %v1170_v37 }
 0x311   : > { %1622 = vrot.lane.b32.xlu0 %v3863_v60, %s3363_s23 }
 0x318   : > { %v1255_v14 = vpop.permute.xlu0 %1254 }
 0x319   : > { %v1264_v16 = vadd.f32 %v1255_v14, %v1236_v12 }
 0x31b   : > { %v1268_v21 = vpack.c.bf16 %v1264_v16, %v1264_v16 }
 0x31d   : > { %v1315_v27 = vunpack.c.l.b16 %v1268_v21 }
 0x31f   : > { %v3883_v23 = vpack.c.b16 %v1316_v26, %v1315_v27 }
 0x320   : > { %v1119_v30 = vpop.permute.xlu0 %1118 }
 0x321   : > { %v1130_v32 = vsel %vm1128_vm2, %v1119_v30, %v3762_v46  ;;  %1646 = vrot.lane.b32.xlu0 %v3883_v23, %s3363_s23  ;;  %1318 = vrot.lane.b32.xlu1 %v3883_v23, %s3357_s26  ;;  %s3377_s23 = smov 128  }
 0x322   : > { %v1155_v42 = vsel %vm3813_vm3, %v1130_v32, %v1147_v31 }
 0x323   : > { %v1159_v35 = vmul.f32 %v2668_v10, %v1155_v42  ;;  %v1271_v10 = vpack.c.bf16 %v3756_v44, %v3756_v44 }
 0x325   : > { %v1163_v24 = vadd.f32 %v1159_v35, %v1151_v51  ;;  %v1397_v63 = vunpack.c.l.b16 %v1271_v10 }
 0x327   : > { %v1167_v38 = vmul.f32 0.35355338, %v1163_v24  ;;  %v3927_v5 = vpack.c.b16 %v1397_v63, %v1396_v55 }
 0x328   : > { %v1121_v39 = vpop.permute.xlu0 %1120 }
 0x329   : > { %v1171_v40 = vpack.c.bf16 %v1167_v38, %v1167_v38  ;;  %v1131_v43 = vsel %vm1128_vm2, %v1121_v39, %v3759_v45  ;;  %1479 = vrot.lane.b32.xlu1 %v3883_v23, %s3362_s24  ;;  %v3370_v38 = vmov -1e+30   ;;  %s2295_s24 = sshll.u32 %s4348_s20, 4  ;;  %s2296_s24 = int_to_ptr.hbm [resolvable:$true] %s2295_s24 }
 0x32a   : > { %v1156_v46 = vsel %vm3813_vm3, %v1131_v43, %v1148_v33  ;;  %v3958_v39 = vsel %vm1274_vm6, 0.0, %v3370_v38 }
 0x32b   : > { %v1279_v52 = vunpack.c.l.b16 %v1171_v40  ;;  %v1160_v0 = vmul.f32 %v2671_v29, %v1156_v46  ;;  %v1132_v29 = vsel %vm1128_vm2, %v1123_v57, %v3771_v49 }
 0x32d   : > { %v1280_v53 = vpack.c.b16 %v1279_v52, %v1278_v50  ;;  %v1164_v59 = vadd.f32 %v1160_v0, %v1152_v48 }
 0x32f   : > { %1787 = vrot.lane.b32.xlu0 %v1280_v53, %s3364_s2  ;;  %1453 = vrot.lane.b32.xlu2 %v1280_v53, %s3365_s22  ;;  %v1168_v3 = vmul.f32 0.35355338, %v1164_v59 }
 0x330   : > { %v1140_v62 = vpop.permute.xlu0 %1139 }
 0x331   : > { %v1149_v44 = vsel %vm1145_vm5, %v3771_v49, %v1140_v62  ;;  %1620 = vrot.lane.b32.xlu1 %v1280_v53, %s3366_s7  ;;  %v1172_v7 = vpack.c.bf16 %v1168_v3, %v1168_v3  ;;  %v1273_v49 = vpack.c.bf16 %v3768_v47, %v3768_v47 }
 0x332   : > { %v1157_v45 = vsel %vm3813_vm3, %v1132_v29, %v1149_v44 }
 0x333   : > { %v1161_v4 = vmul.f32 %v2672_v20, %v1157_v45  ;;  %v1310_v1 = vunpack.c.l.b16 %v1172_v7  ;;  %v1427_v56 = vunpack.c.l.b16 %v1273_v49 }
 0x335   : > { %v1165_v6 = vadd.f32 %v1161_v4, %v1153_v41  ;;  %v3938_v20 = vpack.c.b16 %v1427_v56, %v1426_v17 }
 0x337   : > { %v1169_v8 = vmul.f32 0.35355338, %v1165_v6  ;;  %1399 = vrot.lane.b32.xlu0 %v3927_v5, %s3367_s14 }
 0x339   : > { %v1173_v9 = vpack.c.bf16 %v1169_v8, %v1169_v8 }
 0x33b   : > { %v1311_v11 = vunpack.c.l.b16 %v1173_v9 }
 0x33d   : > { %v1312_v12 = vpack.c.b16 %v1311_v11, %v1310_v1 }
 0x33f   : > { %1554 = vrot.lane.b32.xlu0 %v3927_v5, %s3368_s4  ;;  %1644 = vrot.lane.b32.xlu1 %v1312_v12, %s3366_s7 }
 0x340   : > { %1477 = vrot.lane.b32.xlu2 %v1312_v12, %s3365_s22 }
 0x347   : > { %1811 = vrot.lane.b32.xlu1 %v1312_v12, %s3364_s2 }
 0x348   : > { %1789 = vrot.lane.b32.xlu2 %v3863_v60, %s3369_s21 }
 0x350   : > { %1813 = vrot.lane.b32.xlu2 %v3883_v23, %s3369_s21 }
 0x358   : > { %1429 = vrot.lane.b32.xlu2 %v3938_v20, %s3367_s14 }
 0x363   : > { %v1287_v13 = vpop.permute.xlu2 %1286 }
 0x364   : > { %v1292_v14 = vsel %vm1047_vm4, %v1287_v13, 0 }
 0x365   : > { %1301 = vmatpush.bf16.xpose.msra.mxu2 %v1292_v14 }
 0x36c   : > { %2600 = vmatmul.msk.bf16.vlgmr.msra.gmra.mxu2 %vm1047_vm4, %v1280_v53 }
 0x37b   : > { %v1456_v60 = vpop.permute.xlu0 %1455 }
 0x37c   : > { %v1461_v47 = vsel %vm1047_vm4, %v1456_v60, 0 }
 0x37d   : > { %1470 = vmatpush.bf16.xpose.msrb.mxu1 %v1461_v47 }
 0x383   : > { %v1623_v15 = vpop.permute.xlu0 %1622 }
 0x384   : > { %v1628_v34 = vsel %vm1047_vm4, %v1623_v15, 0 }
 0x385   : > { %1637 = vmatpush.bf16.xpose.msra.mxu1 %v1628_v34 }
 0x389   : > { %v1454_v16 = vpop.permute.xlu2 %1453 }
 0x38a   : > { %2604 = vmatmul.msk.bf16.vlgmr.msrb.gmra.mxu1 %vm1047_vm4, %v1454_v16 }
 0x393   : > { %v1319_v19 = vpop.permute.xlu1 %1318  ;;  %v1647_v22 = vpop.permute.xlu0 %1646 }
 0x394   : > { %v1324_v21 = vsel %vm1047_vm4, %v1319_v19, 0  ;;  %v1652_v28 = vsel %vm1047_vm4, %v1647_v22, 0 }
 0x395   : > { %1333 = vmatpush.bf16.xpose.msrb.mxu3 %v1324_v21 }
 0x39a   : > { %v1478_v25 = vpop.permute.xlu2 %1477 }
 0x39b   : > { %v1480_v26 = vpop.permute.xlu1 %1479 }
 0x39c   : > { %2601 = vmatmul.msk.bf16.vlgmr.msrb.gmra.mxu3 %vm1047_vm4, %v1312_v12  ;;  %v1485_v27 = vsel %vm1047_vm4, %v1480_v26, 0 }
 0x39d   : > { %1494 = vmatpush.bf16.xpose.msrb.mxu0 %v1485_v27 }
 0x3a1   : > { %v1788_v23 = vpop.permute.xlu0 %1787 }
 0x3a2   : > { %v1790_v30 = vpop.permute.xlu2 %1789 }
 0x3a3   : > { %v1795_v31 = vsel %vm1047_vm4, %v1790_v30, 0  ;;  %v1621_v32 = vpop.permute.xlu1 %1620 }
 0x3a4   : > { %1804 = vmatpush.bf16.xpose.msrb.mxu1 %v1795_v31  ;;  %2605 = vmatmul.msk.bf16.vlgmr.msrb.gmra.mxu0 %vm1047_vm4, %v1478_v25 }
 0x3a5   : > { %1661 = vmatpush.bf16.xpose.msra.mxu0 %v1652_v28  ;;  %2608 = vmatmul.msk.bf16.vlgmr.msra.gmra.mxu1 %vm1047_vm4, %v1621_v32 }
 0x3a9   : > { %v1400_v42 = vpop.permute.xlu0 %1399 }
 0x3aa   : > { %v1814_v51 = vpop.permute.xlu2 %1813  ;;  %1412 = vmatpush.bf16.msrb.mxu2 %v1400_v42 }
 0x3ab   : > { %v1819_v2 = vsel %vm1047_vm4, %v1814_v51, 0 }
 0x3ad   : > { %1828 = vmatpush.bf16.xpose.msrb.mxu0 %v1819_v2 }
 0x3b1   : > { %v1555_v35 = vpop.permute.xlu0 %1554  ;;  %v1645_v36 = vpop.permute.xlu1 %1644 }
 0x3b2   : > { %v1430_v24 = vpop.permute.xlu2 %1429  ;;  %1567 = vmatpush.bf16.msra.mxu2 %v1555_v35 }
 0x3b3   : > { %1442 = vmatpush.bf16.msra.mxu3 %v1430_v24 }
 0x3b4   : > { %2609 = vmatmul.msk.bf16.vlgmr.msra.gmra.mxu0 %vm1047_vm4, %v1645_v36 }
 0x3b5   : > { %2612 = vmatmul.msk.bf16.vlgmr.msrb.gmra.mxu1 %vm1047_vm4, %v1788_v23 }
 0x3b9   : > { %v1812_v37 = vpop.permute.xlu1 %1811 }
 0x3c4   : > { %2613 = vmatmul.msk.bf16.vlgmr.msrb.gmra.mxu0 %vm1047_vm4, %v1812_v37 }
 0x3ef   : > { %v1303_v33 = vpop.f32.mrf.mxu2 }
 0x3f0   : > { %v3961_v40 = vadd.f32 %v1303_v33, %v3958_v39 }
 0x3f2   : > { %v1341_v43 = vsel %vm1340_vm7, %v3961_v40, -inf }
 0x3f3   : > { %1342 = vmax.xlane.f32.xlu0 %v1341_v43 }
 0x3f7   : > { %v1305_v61 = vpop.f32.mrf.mxu2 }
 0x3f8   : > { %v3971_v0 = vadd.f32 %v1305_v61, %v3958_v39 }
 0x3fa   : > { %v1344_v57 = vsel %vm1340_vm7, %v3971_v0, -inf }
 0x407   : > { %v1472_v46 = vpop.f32.mrf.mxu1 }
 0x408   : > { %v3966_v50 = vadd.f32 %v1472_v46, %v3958_v39 }
 0x40a   : > { %v1501_v52 = vsel %vm1340_vm7, %v3966_v50, -inf }
 0x40b   : > { %1502 = vmax.xlane.f32.xlu2 %v1501_v52 }
 0x40f   : > { %v1474_v10 = vpop.f32.mrf.mxu1 }
 0x410   : > { %v3974_v48 = vadd.f32 %v1474_v10, %v3958_v39 }
 0x412   : > { %v1504_v53 = vsel %vm1340_vm7, %v3974_v48, -inf }
 0x413   : > { %1505 = vmax.xlane.f32.xlu1 %v1504_v53  ;;  %1345 = vmax.xlane.f32.xlu2 %v1344_v57 }
 0x41f   : > { %v1335_v58 = vpop.f32.mrf.mxu3 }
 0x420   : > { %v3981_v59 = vadd.f32 %v1335_v58, %v3958_v39 }
 0x421   : > { %v1496_v62 = vpop.f32.mrf.mxu0 }
 0x422   : > { %v3984_v63 = vadd.f32 %v1496_v62, %v3958_v39  ;;  %v1639_v29 = vpop.f32.mrf.mxu1  ;;  %v1347_v44 = vsel %vm1340_vm7, %v3981_v59, -inf }
 0x423   : > { %1348 = vmax.xlane.f32.xlu1 %v1347_v44  ;;  %v3991_v55 = vadd.f32 %v1639_v29, %v3958_v39 }
 0x424   : > { %v1507_v45 = vsel %vm1340_vm7, %v3984_v63, -inf }
 0x425   : > { %1508 = vmax.xlane.f32.xlu0 %v1507_v45  ;;  %v1668_v6 = vsel %vm1340_vm7, %v3991_v55, -inf }
 0x427   : > { %v1337_v41 = vpop.f32.mrf.mxu3 }
 0x428   : > { %v3994_v3 = vadd.f32 %v1337_v41, %v3958_v39 }
 0x429   : > { %v1498_v4 = vpop.f32.mrf.mxu0 }
 0x42a   : > { %v1641_v7 = vpop.f32.mrf.mxu1  ;;  %v1350_v8 = vsel %vm1340_vm7, %v3994_v3, -inf  ;;  %v4023_v34 = vadd.f32 %v1498_v4, %v3958_v39 }
 0x42b   : > { %1579 = vrot.lane.b32.xlu2 %v3938_v20, %s3368_s4  ;;  %1669 = vmax.xlane.f32.xlu1 %v1668_v6  ;;  %v4003_v9 = vadd.f32 %v1641_v7, %v3958_v39 }
 0x42c   : > { %v1510_v16 = vsel %vm1340_vm7, %v4023_v34, -inf }
 0x42d   : > { %1351 = vmax.xlane.f32.xlu0 %v1350_v8  ;;  %v1671_v11 = vsel %vm1340_vm7, %v4003_v9, -inf }
 0x431   : > { %v1663_v1 = vpop.f32.mrf.mxu0 }
 0x432   : > { %v1806_v12 = vpop.f32.mrf.mxu1  ;;  %v4028_v19 = vadd.f32 %v1663_v1, %v3958_v39 }
 0x433   : > { %v4008_v49 = vadd.f32 %v1806_v12, %v3958_v39 }
 0x434   : > { %v1674_v21 = vsel %vm1340_vm7, %v4028_v19, -inf }
 0x435   : > { %1672 = vmax.xlane.f32.xlu0 %v1671_v11  ;;  %v1835_v13 = vsel %vm1340_vm7, %v4008_v49, -inf }
 0x439   : > { %v1665_v54 = vpop.f32.mrf.mxu0 }
 0x43a   : > { %v4011_v56 = vadd.f32 %v1665_v54, %v3958_v39  ;;  %v1808_v26 = vpop.f32.mrf.mxu1 }
 0x43b   : > { %v4038_v28 = vadd.f32 %v1808_v26, %v3958_v39 }
 0x43c   : > { %v1677_v17 = vsel %vm1340_vm7, %v4011_v56, -inf }
 0x43d   : > { %1678 = vmax.xlane.f32.xlu1 %v1677_v17  ;;  %1836 = vmax.xlane.f32.xlu0 %v1835_v13  ;;  %v1838_v31 = vsel %vm1340_vm7, %v4038_v28, -inf }
 0x441   : > { %v1830_v14 = vpop.f32.mrf.mxu0 }
 0x442   : > { %v4033_v22 = vadd.f32 %v1830_v14, %v3958_v39 }
 0x444   : > { %v1841_v25 = vsel %vm1340_vm7, %v4033_v22, -inf }
 0x449   : > { %v1832_v60 = vpop.f32.mrf.mxu0 }
 0x44a   : > { %v4018_v47 = vadd.f32 %v1832_v60, %v3958_v39 }
 0x44c   : > { %v1844_v15 = vsel %vm1340_vm7, %v4018_v47, -inf }
 0x44d   : > { %1845 = vmax.xlane.f32.xlu1 %v1844_v15 }
 0x454   : > { %1511 = vmax.xlane.f32.xlu2 %v1510_v16 }
 0x45c   : > { %1675 = vmax.xlane.f32.xlu2 %v1674_v21 }
 0x464   : > { %1842 = vmax.xlane.f32.xlu2 %v1841_v25 }
 0x466   : > { %v1343_v27 = vpop.xlane.xlu0 %1342 }
 0x467   : > { %v1353_v23 = vsub.f32 %v3961_v40, %v1343_v27 }
 0x469   : > { %v1357_v30 = vmul.f32 1.442695, %v1353_v23 }
 0x46b   : > { %2852 = vpow2.f32 %v1357_v30 }
 0x46c   : > { %1839 = vmax.xlane.f32.xlu2 %v1838_v31 }
 0x471   : > { %v4043_v32 = vpop.eup %2852 }
 0x472   : > { %v1365_v42 = vsel %vm1340_vm7, %v4043_v32, 0.0 }
 0x473   : > { %1366 = vadd.xlane.f32.xlu1 %v1365_v42 }
 0x47e   : > { %v1503_v51 = vpop.xlane.xlu2 %1502 }
 0x47f   : > { %v1513_v2 = vsub.f32 %v3966_v50, %v1503_v51 }
 0x481   : > { %v1517_v35 = vmul.f32 1.442695, %v1513_v2 }
 0x483   : > { %2854 = vpow2.f32 %v1517_v35 }
 0x486   : > { %v1346_v24 = vpop.xlane.xlu2 %1345  ;;  %v1506_v33 = vpop.xlane.xlu1 %1505 }
 0x487   : > { %v1354_v36 = vsub.f32 %v3971_v0, %v1346_v24  ;;  %v1514_v53 = vsub.f32 %v3974_v48, %v1506_v33 }
 0x489   : > { %v4049_v37 = vpop.eup %2854  ;;  %v1359_v38 = vmul.f32 1.442695, %v1354_v36  ;;  %v1519_v58 = vmul.f32 1.442695, %v1514_v53 }
 0x48a   : > { %v1525_v39 = vsel %vm1340_vm7, %v4049_v37, 0.0 }
 0x48b   : > { %1526 = vadd.xlane.f32.xlu2 %v1525_v39  ;;  %2856 = vpow2.f32 %v1359_v38 }
 0x48e   : > { %v1580_v40 = vpop.permute.xlu2 %1579 }
 0x48f   : > { %1592 = vmatpush.bf16.msrb.mxu3 %v1580_v40 }
 0x491   : > { %v4053_v43 = vpop.eup %2856 }
 0x492   : > { %v1368_v46 = vsel %vm1340_vm7, %v4053_v43, 0.0 }
 0x493   : > { %1369 = vadd.xlane.f32.xlu0 %v1368_v46 }
 0x496   : > { %v1349_v50 = vpop.xlane.xlu1 %1348 }
 0x497   : > { %v1355_v52 = vsub.f32 %v3981_v59, %v1349_v50 }
 0x498   : > { %v1509_v61 = vpop.xlane.xlu0 %1508 }
 0x499   : > { %v1361_v0 = vmul.f32 1.442695, %v1355_v52  ;;  %v1515_v10 = vsub.f32 %v3984_v63, %v1509_v61 }
 0x49b   : > { %2858 = vpow2.f32 %v1361_v0  ;;  %v1521_v57 = vmul.f32 1.442695, %v1515_v10 }
 0x49d   : > { %2860 = vpow2.f32 %v1521_v57 }
 0x49e   : > { %v1670_v62 = vpop.xlane.xlu1 %1669  ;;  %2862 = vpow2.f32 %v1519_v58 }
 0x49f   : > { %v1680_v59 = vsub.f32 %v3991_v55, %v1670_v62 }
 0x4a0   : > { %v1352_v48 = vpop.xlane.xlu0 %1351 }
 0x4a1   : > { %v4060_v29 = vpop.eup %2858  ;;  %v1684_v41 = vmul.f32 1.442695, %v1680_v59  ;;  %v1356_v6 = vsub.f32 %v3994_v3, %v1352_v48 }
 0x4a2   : > { %v1371_v44 = vsel %vm1340_vm7, %v4060_v29, 0.0 }
 0x4a3   : > { %v4064_v45 = vpop.eup %2860  ;;  %1372 = vadd.xlane.f32.xlu2 %v1371_v44  ;;  %2864 = vpow2.f32 %v1684_v41  ;;  %v1363_v8 = vmul.f32 1.442695, %v1356_v6 }
 0x4a4   : > { %v1531_v63 = vsel %vm1340_vm7, %v4064_v45, 0.0  ;;  %v4069_v4 = vpop.eup %2862 }
 0x4a5   : > { %1532 = vadd.xlane.f32.xlu1 %v1531_v63  ;;  %v1528_v7 = vsel %vm1340_vm7, %v4069_v4, 0.0  ;;  %2866 = vpow2.f32 %v1363_v8 }
 0x4a8   : > { %v1673_v1 = vpop.xlane.xlu0 %1672 }
 0x4a9   : > { %v4074_v11 = vpop.eup %2864  ;;  %v1681_v55 = vsub.f32 %v4003_v9, %v1673_v1 }
 0x4aa   : > { %v1692_v12 = vsel %vm1340_vm7, %v4074_v11, 0.0 }
 0x4ab   : > { %v1686_v54 = vmul.f32 1.442695, %v1681_v55  ;;  %v4079_v17 = vpop.eup %2866 }
 0x4ac   : > { %v1374_v3 = vsel %vm1340_vm7, %v4079_v17, 0.0 }
 0x4ad   : > { %1529 = vadd.xlane.f32.xlu1 %v1528_v7  ;;  %2868 = vpow2.f32 %v1686_v54 }
 0x4b0   : > { %v1679_v60 = vpop.xlane.xlu1 %1678  ;;  %v1837_v39 = vpop.xlane.xlu0 %1836 }
 0x4b1   : > { %v1683_v16 = vsub.f32 %v4011_v56, %v1679_v60  ;;  %v1847_v33 = vsub.f32 %v4008_v49, %v1837_v39 }
 0x4b3   : > { %v4083_v13 = vpop.eup %2868  ;;  %v1690_v25 = vmul.f32 1.442695, %v1683_v16  ;;  %v1851_v46 = vmul.f32 1.442695, %v1847_v33 }
 0x4b4   : > { %v1695_v14 = vsel %vm1340_vm7, %v4083_v13, 0.0 }
 0x4b5   : > { %1693 = vadd.xlane.f32.xlu1 %v1692_v12 }
 0x4bd   : > { %1375 = vadd.xlane.f32.xlu1 %v1374_v3 }
 0x4c0   : > { %v1846_v40 = vpop.xlane.xlu1 %1845 }
 0x4c5   : > { %1696 = vadd.xlane.f32.xlu1 %v1695_v14 }
 0x4c7   : > { %v1512_v9 = vpop.xlane.xlu2 %1511 }
 0x4c8   : > { %v1516_v15 = vsub.f32 %v4023_v34, %v1512_v9 }
 0x4ca   : > { %v1523_v21 = vmul.f32 1.442695, %v1516_v15 }
 0x4cc   : > { %2870 = vpow2.f32 %v1523_v21 }
 0x4cd   : > { %2872 = vpow2.f32 %v1690_v25 }
 0x4cf   : > { %v1676_v26 = vpop.xlane.xlu2 %1675 }
 0x4d0   : > { %v1682_v27 = vsub.f32 %v4028_v19, %v1676_v26 }
 0x4d2   : > { %v4090_v23 = vpop.eup %2870  ;;  %v1688_v30 = vmul.f32 1.442695, %v1682_v27 }
 0x4d3   : > { %v1534_v31 = vsel %vm1340_vm7, %v4090_v23, 0.0  ;;  %v4094_v51 = vpop.eup %2872 }
 0x4d4   : > { %2874 = vpow2.f32 %v1688_v30  ;;  %1535 = vadd.xlane.f32.xlu0 %v1534_v31  ;;  %v1701_v19 = vsel %vm1340_vm7, %v4094_v51, 0.0 }
 0x4d7   : > { %v1843_v42 = vpop.xlane.xlu2 %1842 }
 0x4d8   : > { %v1849_v48 = vsub.f32 %v4033_v22, %v1843_v42 }
 0x4da   : > { %v4096_v34 = vpop.eup %2874  ;;  %v1855_v6 = vmul.f32 1.442695, %v1849_v48 }
 0x4db   : > { %v1698_v56 = vsel %vm1340_vm7, %v4096_v34, 0.0 }
 0x4dc   : > { %1699 = vadd.xlane.f32.xlu2 %v1698_v56  ;;  %1702 = vadd.xlane.f32.xlu0 %v1701_v19 }
 0x4de   : > { %1721 = vrot.lane.b32.xlu1 %v3927_v5, %s3371_s8 }
 0x4df   : > { %v1840_v2 = vpop.xlane.xlu2 %1839 }
 0x4e0   : > { %v1848_v35 = vsub.f32 %v4038_v28, %v1840_v2  ;;  %v1850_v28 = vsub.f32 %v4018_v47, %v1846_v40 }
 0x4e2   : > { %v1853_v24 = vmul.f32 1.442695, %v1848_v35  ;;  %v1857_v52 = vmul.f32 1.442695, %v1850_v28 }
 0x4e4   : > { %2876 = vpow2.f32 %v1853_v24 }
 0x4e5   : > { %2878 = vpow2.f32 %v1851_v46 }
 0x4e6   : > { %v1367_v50 = vpop.xlane.xlu1 %1366 }
 0x4e7   : > { %2880 = vrcp.f32 %v1367_v50 }
 0x4e8   : > { %2882 = vpow2.f32 %v1857_v52 }
 0x4ea   : > { %v4104_v36 = vpop.eup %2876 }
 0x4eb   : > { %v1862_v38 = vsel %vm1340_vm7, %v4104_v36, 0.0  ;;  %v4113_v61 = vpop.eup %2878 }
 0x4ec   : > { %1863 = vadd.xlane.f32.xlu0 %v1862_v38 }
 0x4ed   : > { %v2881_v49 = vpop.eup %2880 }
 0x4ee   : > { %v1381_v10 = vmul.f32 %v2881_v49, %v4043_v32  ;;  %v4118_v53 = vpop.eup %2882 }
 0x4ef   : > { %v1868_v58 = vsel %vm1340_vm7, %v4118_v53, 0.0 }
 0x4f0   : > { %v1385_v57 = vpack.c.bf16 %v1381_v10, %v1381_v10 }
 0x4f2   : > { %v1391_v44 = vunpack.c.l.b16 %v1385_v57 }
 0x4f4   : > { %1888 = vrot.lane.b32.xlu2 %v3927_v5, %s3372_s28  ;;  %v1859_v5 = vsel %vm1340_vm7, %v4113_v61, 0.0 }
 0x4fc   : > { %1913 = vrot.lane.b32.xlu2 %v3938_v20, %s3372_s28 }
 0x4fe   : > { %v1527_v41 = vpop.xlane.xlu2 %1526 }
 0x500   : > { %1746 = vrot.lane.b32.xlu0 %v3938_v20, %s3371_s8 }
 0x506   : > { %v1370_v0 = vpop.xlane.xlu0 %1369 }
 0x507   : > { %2884 = vrcp.f32 %v1370_v0 }
 0x508   : > { %1860 = vadd.xlane.f32.xlu1 %v1859_v5  ;;  %2886 = vrcp.f32 %v1527_v41 }
 0x509   : > { %2888 = vpow2.f32 %v1855_v6 }
 0x50d   : > { %v2885_v47 = vpop.eup %2884 }
 0x50e   : > { %v1382_v20 = vmul.f32 %v2885_v47, %v4053_v43  ;;  %v2887_v8 = vpop.eup %2886 }
 0x50f   : > { %v1541_v43 = vmul.f32 %v2887_v8, %v4049_v37  ;;  %v4126_v1 = vpop.eup %2888 }
 0x510   : > { %1869 = vadd.xlane.f32.xlu1 %v1868_v58  ;;  %v1386_v62 = vpack.c.bf16 %v1382_v20, %v1382_v20  ;;  %v1865_v22 = vsel %vm1340_vm7, %v4126_v1, 0.0 }
 0x511   : > { %v1545_v12 = vpack.c.bf16 %v1541_v43, %v1541_v43 }
 0x512   : > { %v1392_v59 = vunpack.c.l.b16 %v1386_v62 }
 0x513   : > { %v1551_v9 = vunpack.c.l.b16 %v1545_v12 }
 0x514   : > { %v1393_v63 = vpack.c.b16 %v1392_v59, %v1391_v44 }
 0x516   : > { %2602 = vmatmul.msk.bf16.vlgmr.msrb.gmra.mxu2 %vm1340_vm7, %v1393_v63  ;;  %v1373_v54 = vpop.xlane.xlu2 %1372 }
 0x518   : > { %v1533_v32 = vpop.xlane.xlu1 %1532 }
 0x520   : > { %v1530_v7 = vpop.xlane.xlu1 %1529 }
 0x521   : > { %2890 = vrcp.f32 %v1530_v7 }
 0x522   : > { %2892 = vrcp.f32 %v1373_v54 }
 0x527   : > { %v2891_v55 = vpop.eup %2890 }
 0x528   : > { %v1542_v3 = vmul.f32 %v2891_v55, %v4069_v4  ;;  %v1694_v14 = vpop.xlane.xlu1 %1693  ;;  %v2893_v37 = vpop.eup %2892 }
 0x529   : > { %v1383_v25 = vmul.f32 %v2893_v37, %v4060_v29 }
 0x52a   : > { %v1546_v60 = vpack.c.bf16 %v1542_v3, %v1542_v3  ;;  %1866 = vadd.xlane.f32.xlu0 %v1865_v22 }
 0x52b   : > { %v1387_v27 = vpack.c.bf16 %v1383_v25, %v1383_v25 }
 0x52c   : > { %v1552_v15 = vunpack.c.l.b16 %v1546_v60 }
 0x52d   : > { %v1421_v42 = vunpack.c.l.b16 %v1387_v27 }
 0x52e   : > { %v1553_v16 = vpack.c.b16 %v1552_v15, %v1551_v9 }
 0x530   : > { %v1376_v21 = vpop.xlane.xlu1 %1375  ;;  %2606 = vmatmul.msk.bf16.vlgmr.msra.gmra.mxu2 %vm1340_vm7, %v1553_v16 }
 0x531   : > { %2894 = vrcp.f32 %v1376_v21 }
 0x537   : > { %v2895_v26 = vpop.eup %2894 }
 0x538   : > { %v1384_v4 = vmul.f32 %v2895_v26, %v4079_v17  ;;  %v1697_v31 = vpop.xlane.xlu1 %1696 }
 0x539   : > { %2896 = vrcp.f32 %v1697_v31 }
 0x53a   : > { %v1388_v30 = vpack.c.bf16 %v1384_v4, %v1384_v4  ;;  %2898 = vrcp.f32 %v1694_v14 }
 0x53b   : > { %2900 = vrcp.f32 %v1533_v32 }
 0x53c   : > { %v1422_v56 = vunpack.c.l.b16 %v1388_v30 }
 0x53e   : > { %v1423_v19 = vpack.c.b16 %v1422_v56, %v1421_v42 }
 0x53f   : > { %v2897_v2 = vpop.eup %2896 }
 0x540   : > { %2603 = vmatmul.msk.bf16.vlgmr.msra.gmra.mxu3 %vm1340_vm7, %v1423_v19  ;;  %v2899_v35 = vpop.eup %2898  ;;  %v1709_v24 = vmul.f32 %v2897_v2, %v4083_v13 }
 0x541   : > { %v2901_v29 = vpop.eup %2900  ;;  %v1708_v39 = vmul.f32 %v2899_v35, %v4074_v11 }
 0x542   : > { %v1713_v17 = vpack.c.bf16 %v1709_v24, %v1709_v24  ;;  %v1543_v33 = vmul.f32 %v2901_v29, %v4064_v45 }
 0x543   : > { %v1712_v40 = vpack.c.bf16 %v1708_v39, %v1708_v39 }
 0x544   : > { %v1719_v28 = vunpack.c.l.b16 %v1713_v17  ;;  %v1547_v50 = vpack.c.bf16 %v1543_v33, %v1543_v33 }
 0x545   : > { %v1718_v5 = vunpack.c.l.b16 %v1712_v40 }
 0x546   : > { %v1576_v47 = vunpack.c.l.b16 %v1547_v50 }
 0x547   : > { %v1536_v38 = vpop.xlane.xlu0 %1535  ;;  %v1720_v13 = vpack.c.b16 %v1719_v28, %v1718_v5 }
 0x548   : > { %2902 = vrcp.f32 %v1536_v38 }
 0x54e   : > { %v2903_v46 = vpop.eup %2902 }
 0x54f   : > { %v1544_v52 = vmul.f32 %v2903_v46, %v4090_v23  ;;  %v1700_v0 = vpop.xlane.xlu2 %1699  ;;  %v1703_v45 = vpop.xlane.xlu0 %1702 }
 0x550   : > { %v1722_v49 = vpop.permute.xlu1 %1721  ;;  %2904 = vrcp.f32 %v1700_v0 }
 0x551   : > { %v1548_v10 = vpack.c.bf16 %v1544_v52, %v1544_v52  ;;  %1734 = vmatpush.bf16.msrb.mxu2 %v1722_v49  ;;  %2906 = vrcp.f32 %v1703_v45 }
 0x553   : > { %v1577_v57 = vunpack.c.l.b16 %v1548_v10 }
 0x554   : > { %2610 = vmatmul.msk.bf16.vlgmr.msrb.gmra.mxu2 %vm1340_vm7, %v1720_v13 }
 0x555   : > { %v1578_v11 = vpack.c.b16 %v1577_v57, %v1576_v47  ;;  %v2940_v57 = vld [vmem:[#allocation20] sm:$0xff] }
 0x556   : > { %v2905_v58 = vpop.eup %2904 }
 0x557   : > { %v1889_v20 = vpop.permute.xlu2 %1888  ;;  %2607 = vmatmul.msk.bf16.vlgmr.msrb.gmra.mxu3 %vm1340_vm7, %v1578_v11  ;;  %v2907_v23 = vpop.eup %2906  ;;  %v1710_v62 = vmul.f32 %v2905_v58, %v4096_v34 }
 0x558   : > { %1901 = vmatpush.bf16.msra.mxu2 %v1889_v20  ;;  %v1711_v44 = vmul.f32 %v2907_v23, %v4094_v51 }
 0x559   : > { %v1714_v63 = vpack.c.bf16 %v1710_v62, %v1710_v62  ;;  %v2941_v62 = vld [vmem:[#allocation20 + $0x8] sm:$0xff] }
 0x55a   : > { %v1715_v48 = vpack.c.bf16 %v1711_v44, %v1711_v44 }
 0x55b   : > { %v1743_v41 = vunpack.c.l.b16 %v1714_v63  ;;  %v2942_v63 = vld [vmem:[#allocation20 + $0x10] sm:$0xff] }
 0x55c   : > { %v1744_v32 = vunpack.c.l.b16 %v1715_v48 }
 0x55e   : > { %v1745_v8 = vpack.c.b16 %v1744_v32, %v1743_v41 }
 0x55f   : > { %v1864_v59 = vpop.xlane.xlu0 %1863  ;;  %v1914_v7 = vpop.permute.xlu2 %1913 }
 0x560   : > { %2908 = vrcp.f32 %v1864_v59 }
 0x566   : > { %v2909_v55 = vpop.eup %2908 }
 0x567   : > { %v1876_v34 = vmul.f32 %v2909_v55, %v4104_v36 }
 0x569   : > { %v1880_v51 = vpack.c.bf16 %v1876_v34, %v1876_v34  ;;  %v2654_v34 = vld [vmem:[%s3682_s5 + $0x8] sm:$0xff] }
 0x56a   : > { %2100 = vmatpush.bf16.msra.mxu1 %v2654_v34 }
 0x56b   : > { %v1886_v14 = vunpack.c.l.b16 %v1880_v51 }
 0x572   : > { %v1747_v6 = vpop.permute.xlu0 %1746 }
 0x573   : > { %1759 = vmatpush.bf16.msra.mxu3 %v1747_v6 }
 0x576   : > { %2611 = vmatmul.msk.bf16.vlgmr.msra.gmra.mxu3 %vm1340_vm7, %v1745_v8  ;;  %v2943_v8 = vld [vmem:[#allocation20 + $0x18] sm:$0xff] }
 0x577   : > { %1926 = vmatpush.bf16.msrb.mxu3 %v1914_v7 }
 0x57b   : > { %v1861_v43 = vpop.xlane.xlu1 %1860 }
 0x57c   : > { %2910 = vrcp.f32 %v1861_v43 }
 0x582   : > { %v2911_v12 = vpop.eup %2910 }
 0x583   : > { %v1875_v54 = vmul.f32 %v2911_v12, %v4113_v61  ;;  %v1870_v9 = vpop.xlane.xlu1 %1869 }
 0x584   : > { %2912 = vrcp.f32 %v1870_v9 }
 0x585   : > { %v1879_v3 = vpack.c.bf16 %v1875_v54, %v1875_v54 }
 0x587   : > { %v1885_v22 = vunpack.c.l.b16 %v1879_v3 }
 0x589   : > { %v1887_v60 = vpack.c.b16 %v1886_v14, %v1885_v22 }
 0x58a   : > { %v2913_v21 = vpop.eup %2912 }
 0x58b   : > { %2614 = vmatmul.msk.bf16.vlgmr.msra.gmra.mxu2 %vm1340_vm7, %v1887_v60  ;;  %v1878_v36 = vmul.f32 %v2913_v21, %v4118_v53 }
 0x58d   : > { %v1882_v25 = vpack.c.bf16 %v1878_v36, %v1878_v36 }
 0x58f   : > { %v1911_v4 = vunpack.c.l.b16 %v1882_v25 }
 0x599   : > { %v1414_v15 = vpop.f32.mrf.mxu2 }
 0x59a   : > { %1449 = vst.msk [vmem:[#allocation2] sm:$0xff] %vm1047_vm4, %v1414_v15 }
 0x59d   : > { %v1867_v16 = vpop.xlane.xlu0 %1866 }
 0x59e   : > { %2914 = vrcp.f32 %v1867_v16  ;;  %v2653_v16 = vld [vmem:[%s3682_s5] sm:$0xff] }
 0x59f   : > { %2101 = vmatpush.bf16.msra.mxu1 %v2653_v16 }
 0x5a1   : > { %v1416_v37 = vpop.f32.mrf.mxu2 }
 0x5a2   : > { %1450 = vst.msk [vmem:[#allocation2 + $0x8] sm:$0xff] %vm1047_vm4, %v1416_v37 }
 0x5a4   : > { %v2915_v61 = vpop.eup %2914 }
 0x5a5   : > { %v1877_v26 = vmul.f32 %v2915_v61, %v4126_v1 }
 0x5a7   : > { %v1881_v27 = vpack.c.bf16 %v1877_v26, %v1877_v26 }
 0x5a9   : > { %v1910_v30 = vunpack.c.l.b16 %v1881_v27 }
 0x5ab   : > { %v1912_v31 = vpack.c.b16 %v1911_v4, %v1910_v30 }
 0x5ad   : > { %2615 = vmatmul.msk.bf16.vlgmr.msrb.gmra.mxu3 %vm1340_vm7, %v1912_v31 }
 0x5b3   : > { %v1569_v42 = vpop.f32.mrf.mxu2 }
 0x5b4   : > { %1603 = vrot.lane.b32.xlu1 %v1569_v42, %s3373_s11 }
 0x5bb   : > { %v1571_v56 = vpop.f32.mrf.mxu2 }
 0x5bc   : > { %1605 = vrot.lane.b32.xlu2 %v1571_v56, %s3373_s11 }
 0x5c3   : > { %v1444_v53 = vpop.f32.mrf.mxu3 }
 0x5c4   : > { %1451 = vst.msk [vmem:[#allocation2 + $0x10] sm:$0xff] %vm1047_vm4, %v1444_v53 }
 0x5cb   : > { %v1446_v19 = vpop.f32.mrf.mxu3 }
 0x5cc   : > { %1452 = vst.msk [vmem:[#allocation2 + $0x18] sm:$0xff] %vm1047_vm4, %v1446_v19  ;;  %vm1782_vm4 = vcmask 195712  }
 0x5d7   : > { %v1736_v1 = vpop.f32.mrf.mxu2 }
 0x5d8   : > { %1770 = vrot.lane.b32.xlu2 %v1736_v1, %s3374_s1 }
 0x5da   : > { %v1594_v35 = vpop.f32.mrf.mxu3 }
 0x5df   : > { %v1738_v2 = vpop.f32.mrf.mxu2 }
 0x5e0   : > { %1772 = vrot.lane.b32.xlu2 %v1738_v2, %s3374_s1 }
 0x5e2   : > { %v1596_v24 = vpop.f32.mrf.mxu3 }
 0x5e8   : > { %1607 = vrot.lane.b32.xlu2 %v1594_v35, %s3373_s11 }
 0x5f9   : > { %v1761_v38 = vpop.f32.mrf.mxu3 }
 0x5fa   : > { %1774 = vrot.lane.b32.xlu2 %v1761_v38, %s3374_s1 }
 0x601   : > { %v1763_v33 = vpop.f32.mrf.mxu3 }
 0x60e   : > { %v1903_v29 = vpop.f32.mrf.mxu2 }
 0x60f   : > { %1937 = vrot.lane.b32.xlu1 %v1903_v29, %s3375_s29 }
 0x616   : > { %v1606_v39 = vpop.permute.xlu2 %1605  ;;  %v1905_v17 = vpop.f32.mrf.mxu2 }
 0x617   : > { %1617 = vst.msk [vmem:[#allocation2 + $0x8] sm:$0xff] %vm1615_vm8, %v1606_v39  ;;  %1609 = vrot.lane.b32.xlu1 %v1596_v24, %s3373_s11  ;;  %1939 = vrot.lane.b32.xlu0 %v1905_v17, %s3375_s29 }
 0x61f   : > { %1776 = vrot.lane.b32.xlu1 %v1763_v33, %s3374_s1 }
 0x626   : > { %v1604_v40 = vpop.permute.xlu1 %1603 }
 0x627   : > { %1616 = vst.msk [vmem:[#allocation2] sm:$0xff] %vm1615_vm8, %v1604_v40 }
 0x630   : > { %v1928_v46 = vpop.f32.mrf.mxu3 }
 0x631   : > { %1941 = vrot.lane.b32.xlu2 %v1928_v46, %s3375_s29 }
 0x632   : > { %v1771_v28 = vpop.permute.xlu2 %1770 }
 0x633   : > { %1783 = vst.msk [vmem:[#allocation2] sm:$0xff] %vm1782_vm4, %v1771_v28 }
 0x638   : > { %v1930_v50 = vpop.f32.mrf.mxu3 }
 0x639   : > { %1943 = vrot.lane.b32.xlu0 %v1930_v50, %s3375_s29 }
 0x63a   : > { %v1773_v52 = vpop.permute.xlu2 %1772 }
 0x63b   : > { %1784 = vst.msk [vmem:[#allocation2 + $0x8] sm:$0xff] %vm1782_vm4, %v1773_v52 }
 0x642   : > { %v1608_v0 = vpop.permute.xlu2 %1607 }
 0x643   : > { %1618 = vst.msk [vmem:[#allocation2 + $0x10] sm:$0xff] %vm1615_vm8, %v1608_v0 }
 0x654   : > { %v1775_v5 = vpop.permute.xlu2 %1774 }
 0x655   : > { %1785 = vst.msk [vmem:[#allocation2 + $0x10] sm:$0xff] %vm1782_vm4, %v1775_v5 }
 0x681   : > { %v1938_v49 = vpop.permute.xlu1 %1937 }
 0x682   : > { %1950 = vst.msk [vmem:[#allocation2] sm:$0xff] %vm1949_vm9, %v1938_v49 }
 0x689   : > { %v1610_v10 = vpop.permute.xlu1 %1609  ;;  %v1940_v13 = vpop.permute.xlu0 %1939  ;;  %v1954_v47 = vld [vmem:[#allocation2] sm:$0xff] }
 0x68a   : > { %1619 = vst.msk [vmem:[#allocation2 + $0x18] sm:$0xff] %vm1615_vm8, %v1610_v10  ;;  %v4166_v11 = vadd.f32 %v2940_v57, %v1954_v47 }
 0x68b   : > { %1951 = vst.msk [vmem:[#allocation2 + $0x8] sm:$0xff] %vm1949_vm9, %v1940_v13  ;;  %v1942_v20 = vpop.permute.xlu2 %1941  ;;  %v2838_v13 = vld [vmem:[%s734_s18] ss:$0 sm:$0xff] }
 0x68c   : > { %1952 = vst.msk [vmem:[#allocation2 + $0x10] sm:$0xff] %vm1949_vm9, %v1942_v20  ;;  %v1964_v45 = vsel %vm879_vm1, %v4166_v11, 0.0 }
 0x68d   : > { %1965 = vadd.xlane.f32.xlu1 %v1964_v45 }
 0x691   : > { %v1777_v58 = vpop.permute.xlu1 %1776 }
 0x692   : > { %1786 = vst.msk [vmem:[#allocation2 + $0x18] sm:$0xff] %vm1782_vm4, %v1777_v58  ;;  %v1955_v23 = vld [vmem:[#allocation2 + $0x8] sm:$0xff]  ;;  %v2839_v58 = vld [vmem:[%s743_s13] ss:$0 sm:$0xff] }
 0x693   : > { %v4173_v44 = vadd.f32 %v2941_v62, %v1955_v23  ;;  %v1956_v59 = vld [vmem:[#allocation2 + $0x10] sm:$0xff] }
 0x694   : > { %v4175_v48 = vadd.f32 %v2942_v63, %v1956_v59 }
 0x695   : > { %v1967_v41 = vsel %vm879_vm1, %v4173_v44, 0.0 }
 0x696   : > { %1968 = vadd.xlane.f32.xlu2 %v1967_v41  ;;  %v1970_v32 = vsel %vm879_vm1, %v4175_v48, 0.0 }
 0x697   : > { %1971 = vadd.xlane.f32.xlu0 %v1970_v32 }
 0x6ab   : > { %v1944_v6 = vpop.permute.xlu0 %1943 }
 0x6ac   : > { %1953 = vst.msk [vmem:[#allocation2 + $0x18] sm:$0xff] %vm1949_vm9, %v1944_v6 }
 0x6b3   : > { %v1957_v7 = vld [vmem:[#allocation2 + $0x18] sm:$0xff] }
 0x6b4   : > { %v4182_v43 = vadd.f32 %v2943_v8, %v1957_v7 }
 0x6b6   : > { %v1973_v55 = vsel %vm879_vm1, %v4182_v43, 0.0 }
 0x6b7   : > { %1974 = vadd.xlane.f32.xlu1 %v1973_v55  ;;  %v4224_v55 = vld [vmem:[%s854_s0] ss:$0 sm:$0xff]  ;;  %s2293_s0 = sshll.u32 %s3376_s10, 4  ;;  %s2294_s0 = int_to_ptr.vmem [resolvable:$true] %s2293_s0 }
 0x700   : > { %v1966_v12 = vpop.xlane.xlu1 %1965 }
 0x701   : > { %v1976_v51 = vmul.f32 %v1966_v12, %v3693_v18 }
 0x703   : > { %v1980_v54 = vsub.f32 %v4166_v11, %v1976_v51 }
 0x705   : > { %v1984_v3 = vmul.f32 %v1980_v54, %v1980_v54 }
 0x707   : > { %v1988_v14 = vsel %vm879_vm1, %v1984_v3, 0.0 }
 0x708   : > { %1989 = vadd.xlane.f32.xlu2 %v1988_v14 }
 0x709   : > { %v1969_v22 = vpop.xlane.xlu2 %1968 }
 0x70a   : > { %v1977_v60 = vmul.f32 %v1969_v22, %v3693_v18  ;;  %v1972_v9 = vpop.xlane.xlu0 %1971 }
 0x70b   : > { %v1978_v15 = vmul.f32 %v1972_v9, %v3693_v18 }
 0x70c   : > { %v1981_v21 = vsub.f32 %v4173_v44, %v1977_v60 }
 0x70d   : > { %v4195_v36 = vsub.f32 %v4175_v48, %v1978_v15 }
 0x70e   : > { %v1985_v37 = vmul.f32 %v1981_v21, %v1981_v21 }
 0x70f   : > { %v1986_v61 = vmul.f32 %v4195_v36, %v4195_v36 }
 0x710   : > { %v1991_v25 = vsel %vm879_vm1, %v1985_v37, 0.0 }
 0x711   : > { %1992 = vadd.xlane.f32.xlu0 %v1991_v25  ;;  %v1994_v26 = vsel %vm879_vm1, %v1986_v61, 0.0 }
 0x712   : > { %1995 = vadd.xlane.f32.xlu1 %v1994_v26 }
 0x725   : > { %2115 = vrot.lane.b32.xlu0 %v2654_v34, %s3357_s26 }
 0x72a   : > { %v1975_v27 = vpop.xlane.xlu1 %1974 }
 0x72b   : > { %v1979_v4 = vmul.f32 %v1975_v27, %v3693_v18  ;;  %2113 = vrot.lane.b32.xlu1 %v2653_v16, %s3357_s26 }
 0x72d   : > { %v4205_v30 = vsub.f32 %v4182_v43, %v1979_v4 }
 0x72f   : > { %v1987_v31 = vmul.f32 %v4205_v30, %v4205_v30 }
 0x731   : > { %v1997_v42 = vsel %vm879_vm1, %v1987_v31, 0.0 }
 0x732   : > { %1998 = vadd.xlane.f32.xlu2 %v1997_v42 }
 0x74a   : > { %2119 = vrot.lane.b32.xlu2 %v4224_v55, %s3357_s26 }
 0x77b   : > { %v1990_v56 = vpop.xlane.xlu2 %1989 }
 0x77c   : > { %v2000_v53 = vmul.f32 %v1990_v56, %v3693_v18 }
 0x77e   : > { %v2004_v19 = vadd.f32 1e-05, %v2000_v53 }
 0x780   : > { %2916 = vrsqrt.f32 %v2004_v19  ;;  %vm2014_vm11 = vweird.f32 %v2004_v19 }
 0x784   : > { %v1993_v1 = vpop.xlane.xlu0 %1992 }
 0x785   : > { %v2001_v2 = vmul.f32 %v1993_v1, %v3693_v18  ;;  %v1996_v33 = vpop.xlane.xlu1 %1995 }
 0x786   : > { %v2917_v35 = vpop.eup %2916  ;;  %v2002_v50 = vmul.f32 %v1996_v33, %v3693_v18 }
 0x787   : > { %v2009_v24 = vmul.f32 %v2917_v35, %v2004_v19  ;;  %v2005_v38 = vadd.f32 1e-05, %v2001_v2  ;;  %vm2015_vm10 = vweird.f32 %v2917_v35  ;;  %v2656_v2 = vld [vmem:[%s3664_s6 + $0x8] sm:$0xff] }
 0x788   : > { %vm2016_vm12 = vmor %vm2014_vm11, %vm2015_vm10  ;;  %v2006_v49 = vadd.f32 1e-05, %v2002_v50  ;;  %2255 = vmatpush.bf16.msrb.mxu2 %v2656_v2 }
 0x789   : > { %v2010_v29 = vmul.f32 %v2917_v35, %v2009_v24  ;;  %2918 = vrsqrt.f32 %v2005_v38  ;;  %vm2024_vm14 = vweird.f32 %v2005_v38  ;;  %v2655_v24 = vld [vmem:[%s3664_s6] sm:$0xff] }
 0x78a   : > { %2920 = vrsqrt.f32 %v2006_v49  ;;  %vm2034_vm2 = vweird.f32 %v2006_v49 }
 0x78b   : > { %v2011_v39 = vmul.f32 0.5, %v2010_v29 }
 0x78c   : > { %2256 = vmatpush.bf16.msrb.mxu2 %v2655_v24 }
 0x78d   : > { %v2012_v17 = vsub.f32 1.5, %v2011_v39 }
 0x78f   : > { %v2919_v40 = vpop.eup %2918  ;;  %v2013_v46 = vmul.f32 %v2917_v35, %v2012_v17 }
 0x790   : > { %v2019_v28 = vmul.f32 %v2919_v40, %v2005_v38  ;;  %vm2025_vm13 = vweird.f32 %v2919_v40  ;;  %v2921_v41 = vpop.eup %2920 }
 0x791   : > { %v2017_v0 = vsel %vm2016_vm12, %v2917_v35, %v2013_v46  ;;  %vm2026_vm15 = vmor %vm2024_vm14, %vm2025_vm13  ;;  %v2029_v7 = vmul.f32 %v2921_v41, %v2006_v49  ;;  %vm2035_vm0 = vweird.f32 %v2921_v41 }
 0x792   : > { %v2020_v52 = vmul.f32 %v2919_v40, %v2019_v28  ;;  %v2048_v47 = vmul.f32 %v2017_v0, %v1980_v54  ;;  %vm2036_vm3 = vmor %vm2034_vm2, %vm2035_vm0 }
 0x793   : > { %v2030_v34 = vmul.f32 %v2921_v41, %v2029_v7 }
 0x794   : > { %v2021_v5 = vmul.f32 0.5, %v2020_v52  ;;  %v2055_v23 = vmul.f32 %v2838_v13, %v2048_v47 }
 0x795   : > { %v2031_v3 = vmul.f32 0.5, %v2030_v34 }
 0x796   : > { %v2022_v10 = vsub.f32 1.5, %v2021_v5  ;;  %v2062_v32 = vadd.f32 %v2839_v58, %v2055_v23 }
 0x797   : > { %v2116_v57 = vpop.permute.xlu0 %2115  ;;  %v2032_v14 = vsub.f32 1.5, %v2031_v3 }
 0x798   : > { %v2023_v20 = vmul.f32 %v2919_v40, %v2022_v10  ;;  %2128 = vmatpush.bf16.msra.mxu0 %v2116_v57 }
 0x799   : > { %v2033_v60 = vmul.f32 %v2921_v41, %v2032_v14 }
 0x79a   : > { %v2027_v45 = vsel %vm2026_vm15, %v2919_v40, %v2023_v20 }
 0x79b   : > { %v2049_v62 = vmul.f32 %v2027_v45, %v1981_v21  ;;  %v2037_v16 = vsel %vm2036_vm3, %v2921_v41, %v2033_v60 }
 0x79d   : > { %v2056_v59 = vmul.f32 %v2838_v13, %v2049_v62  ;;  %v2114_v63 = vpop.permute.xlu1 %2113 }
 0x79e   : > { %2129 = vmatpush.bf16.msra.mxu0 %v2114_v63 }
 0x79f   : > { %v2063_v6 = vadd.f32 %v2839_v58, %v2056_v59 }
 0x7a1   : > { %v2066_v8 = vpack.c.bf16 %v2063_v6, %v2062_v32 }
 0x7a3   : > { %2624 = vmatmul.msk.bf16.vlgmr.msra.gmra.mxu1 %vm879_vm1, %v2066_v8  ;;  %2626 = vmatmul.msk.bf16.vlgmr.msra.gmra.mxu0 %vm879_vm1, %v2066_v8 }
 0x7a5   : > { %v1999_v12 = vpop.xlane.xlu2 %1998 }
 0x7a6   : > { %v2003_v51 = vmul.f32 %v1999_v12, %v3693_v18  ;;  %v2050_v18 = vmul.f32 %v2037_v16, %v4195_v36 }
 0x7a8   : > { %v2007_v54 = vadd.f32 1e-05, %v2003_v51  ;;  %v2057_v27 = vmul.f32 %v2838_v13, %v2050_v18 }
 0x7aa   : > { %2922 = vrsqrt.f32 %v2007_v54  ;;  %vm2044_vm6 = vweird.f32 %v2007_v54  ;;  %v2064_v31 = vadd.f32 %v2839_v58, %v2057_v27 }
 0x7ad   : > { %v2120_v53 = vpop.permute.xlu2 %2119 }
 0x7b0   : > { %v2923_v22 = vpop.eup %2922 }
 0x7b1   : > { %v2039_v9 = vmul.f32 %v2923_v22, %v2007_v54  ;;  %vm2045_vm5 = vweird.f32 %v2923_v22 }
 0x7b2   : > { %vm2046_vm7 = vmor %vm2044_vm6, %vm2045_vm5 }
 0x7b3   : > { %v2040_v15 = vmul.f32 %v2923_v22, %v2039_v9 }
 0x7b5   : > { %v2041_v21 = vmul.f32 0.5, %v2040_v15 }
 0x7b7   : > { %v2042_v37 = vsub.f32 1.5, %v2041_v21 }
 0x7b9   : > { %v2043_v61 = vmul.f32 %v2923_v22, %v2042_v37 }
 0x7bb   : > { %v2047_v25 = vsel %vm2046_vm7, %v2923_v22, %v2043_v61 }
 0x7bc   : > { %v2051_v26 = vmul.f32 %v2047_v25, %v4205_v30 }
 0x7be   : > { %v2058_v4 = vmul.f32 %v2838_v13, %v2051_v26 }
 0x7c0   : > { %v2065_v42 = vadd.f32 %v2839_v58, %v2058_v4 }
 0x7c2   : > { %v2067_v56 = vpack.c.bf16 %v2065_v42, %v2064_v31 }
 0x7c4   : > { %2625 = vmatmul.msk.bf16.gmra.mxu1 %vm879_vm1, %v2067_v56  ;;  %2627 = vmatmul.msk.bf16.gmra.mxu0 %vm879_vm1, %v2067_v56 }
 0x820   : > { %v2131_v19 = vpop.f32.mrf.mxu0  ;;  %v2103_v52 = vpop.f32.mrf.mxu1 }
 0x821   : > { %v2132_v36 = vadd.f32 %v2131_v19, %v2120_v53  ;;  %v2104_v51 = vadd.f32 %v4224_v55, %v2103_v52 }
 0x823   : > { %v2628_v1 = vmul.f32 -1.442695, %v2132_v36 }
 0x825   : > { %2924 = vpow2.f32 %v2628_v1 }
 0x828   : > { %v2133_v35 = vpop.f32.mrf.mxu0  ;;  %v2105_v32 = vpop.f32.mrf.mxu1 }
 0x829   : > { %v2134_v30 = vadd.f32 %v2133_v35, %v2120_v53  ;;  %v2106_v54 = vadd.f32 %v4224_v55, %v2105_v32 }
 0x82b   : > { %v2925_v38 = vpop.eup %2924  ;;  %v2629_v29 = vmul.f32 -1.442695, %v2134_v30 }
 0x82c   : > { %v2153_v39 = vadd.f32 1.0, %v2925_v38 }
 0x82d   : > { %2926 = vpow2.f32 %v2629_v29 }
 0x82e   : > { %2928 = vrcp.f32 %v2153_v39  ;;  %v2168_v49 = vand.u32 2147483648, %v2153_v39  ;;  %vm2162_vm4 = vweird.f32 %v2153_v39  ;;  %v2166_v10 = vand.u32 2147483647, %v2153_v39 }
 0x830   : > { %v2169_v20 = vor.u32 1.1754944e-38, %v2168_v49  ;;  %vm2167_vm10 = vcmp.eq.f32.partialorder %v2166_v10, 8.507059e+37 }
 0x833   : > { %v2927_v17 = vpop.eup %2926 }
 0x834   : > { %v2929_v33 = vpop.eup %2928  ;;  %v2154_v40 = vadd.f32 1.0, %v2927_v17 }
 0x835   : > { %v2158_v46 = vmul.f32 %v2929_v33, %v2153_v39  ;;  %vm2163_vm8 = vweird.f32 %v2929_v33 }
 0x836   : > { %2930 = vrcp.f32 %v2154_v40  ;;  %vm2164_vm9 = vmor %vm2162_vm4, %vm2163_vm8  ;;  %v2183_v45 = vand.u32 2147483648, %v2154_v40  ;;  %v2181_v23 = vand.u32 2147483647, %v2154_v40  ;;  %vm2177_vm12 = vweird.f32 %v2154_v40 }
 0x837   : > { %v2159_v28 = vsub.f32 1.0, %v2158_v46 }
 0x838   : > { %v2184_v6 = vor.u32 1.1754944e-38, %v2183_v45  ;;  %vm2182_vm14 = vcmp.eq.f32.partialorder %v2181_v23, 8.507059e+37 }
 0x839   : > { %v2160_v50 = vmul.f32 %v2929_v33, %v2159_v28 }
 0x83b   : > { %v2161_v0 = vadd.f32 %v2929_v33, %v2160_v50 }
 0x83c   : > { %v2931_v5 = vpop.eup %2930 }
 0x83d   : > { %v2173_v13 = vmul.f32 %v2931_v5, %v2154_v40  ;;  %v2165_v47 = vsel %vm2164_vm9, %v2929_v33, %v2161_v0  ;;  %vm2178_vm11 = vweird.f32 %v2931_v5 }
 0x83e   : > { %v2170_v59 = vsel %vm2167_vm10, %v2169_v20, %v2165_v47  ;;  %vm2179_vm13 = vmor %vm2177_vm12, %vm2178_vm11 }
 0x83f   : > { %v2174_v57 = vsub.f32 1.0, %v2173_v13  ;;  %v2217_v8 = vmul.f32 %v2170_v59, %v2132_v36  ;;  %v2841_v13 = vld [vmem:[%s857_s27] ss:$0 sm:$0xff] }
 0x841   : > { %v2175_v58 = vmul.f32 %v2931_v5, %v2174_v57  ;;  %v2136_v62 = vpop.f32.mrf.mxu0  ;;  %v2221_v14 = vmul.f32 %v2217_v8, %v2104_v51  ;;  %v2108_v31 = vpop.f32.mrf.mxu1 }
 0x842   : > { %v2137_v63 = vadd.f32 %v2136_v62, %v2120_v53  ;;  %v2109_v50 = vadd.f32 %v4224_v55, %v2108_v31 }
 0x843   : > { %v2176_v41 = vadd.f32 %v2931_v5, %v2175_v58 }
 0x844   : > { %v2630_v7 = vmul.f32 -1.442695, %v2137_v63 }
 0x845   : > { %v2180_v34 = vsel %vm2179_vm13, %v2931_v5, %v2176_v41 }
 0x846   : > { %v2185_v12 = vsel %vm2182_vm14, %v2184_v6, %v2180_v34  ;;  %2932 = vpow2.f32 %v2630_v7 }
 0x847   : > { %v2218_v3 = vmul.f32 %v2185_v12, %v2134_v30 }
 0x849   : > { %v2222_v22 = vmul.f32 %v2218_v3, %v2106_v54  ;;  %v2138_v60 = vpop.f32.mrf.mxu0  ;;  %v2110_v17 = vpop.f32.mrf.mxu1 }
 0x84a   : > { %v2139_v9 = vadd.f32 %v2138_v60, %v2120_v53  ;;  %v2111_v52 = vadd.f32 %v4224_v55, %v2110_v17 }
 0x84b   : > { %v2225_v15 = vpack.c.bf16 %v2222_v22, %v2221_v14 }
 0x84c   : > { %v2933_v16 = vpop.eup %2932  ;;  %v2631_v21 = vmul.f32 -1.442695, %v2139_v9 }
 0x84d   : > { %v2155_v37 = vadd.f32 1.0, %v2933_v16  ;;  %2640 = vmatmul.msk.bf16.vlgmr.msrb.gmra.mxu2 %vm879_vm1, %v2225_v15 }
 0x84e   : > { %2934 = vpow2.f32 %v2631_v21 }
 0x84f   : > { %2936 = vrcp.f32 %v2155_v37  ;;  %v2198_v53 = vand.u32 2147483648, %v2155_v37  ;;  %vm2192_vm0 = vweird.f32 %v2155_v37  ;;  %v2196_v19 = vand.u32 2147483647, %v2155_v37 }
 0x851   : > { %v2199_v35 = vor.u32 1.1754944e-38, %v2198_v53  ;;  %vm2197_vm3 = vcmp.eq.f32.partialorder %v2196_v19, 8.507059e+37 }
 0x854   : > { %v2935_v18 = vpop.eup %2934 }
 0x855   : > { %v2937_v61 = vpop.eup %2936  ;;  %v2156_v25 = vadd.f32 1.0, %v2935_v18 }
 0x856   : > { %v2188_v26 = vmul.f32 %v2937_v61, %v2155_v37  ;;  %vm2193_vm15 = vweird.f32 %v2937_v61 }
 0x857   : > { %2938 = vrcp.f32 %v2156_v25  ;;  %vm2194_vm2 = vmor %vm2192_vm0, %vm2193_vm15  ;;  %v2213_v24 = vand.u32 2147483648, %v2156_v25  ;;  %v2211_v38 = vand.u32 2147483647, %v2156_v25  ;;  %vm2207_vm6 = vweird.f32 %v2156_v25 }
 0x858   : > { %v2189_v27 = vsub.f32 1.0, %v2188_v26 }
 0x859   : > { %v2214_v33 = vor.u32 1.1754944e-38, %v2213_v24  ;;  %vm2212_vm8 = vcmp.eq.f32.partialorder %v2211_v38, 8.507059e+37 }
 0x85a   : > { %v2190_v4 = vmul.f32 %v2937_v61, %v2189_v27 }
 0x85c   : > { %v2191_v42 = vadd.f32 %v2937_v61, %v2190_v4 }
 0x85d   : > { %v2939_v56 = vpop.eup %2938 }
 0x85e   : > { %v2203_v36 = vmul.f32 %v2939_v56, %v2156_v25  ;;  %v2195_v1 = vsel %vm2194_vm2, %v2937_v61, %v2191_v42  ;;  %vm2208_vm5 = vweird.f32 %v2939_v56 }
 0x85f   : > { %v2200_v29 = vsel %vm2197_vm3, %v2199_v35, %v2195_v1  ;;  %vm2209_vm7 = vmor %vm2207_vm6, %vm2208_vm5 }
 0x860   : > { %v2204_v2 = vsub.f32 1.0, %v2203_v36  ;;  %v2219_v40 = vmul.f32 %v2200_v29, %v2137_v63 }
 0x862   : > { %v2205_v30 = vmul.f32 %v2939_v56, %v2204_v2  ;;  %v2223_v5 = vmul.f32 %v2219_v40, %v2109_v50 }
 0x864   : > { %v2206_v39 = vadd.f32 %v2939_v56, %v2205_v30 }
 0x866   : > { %v2210_v46 = vsel %vm2209_vm7, %v2939_v56, %v2206_v39 }
 0x867   : > { %v2215_v28 = vsel %vm2212_vm8, %v2214_v33, %v2210_v46 }
 0x868   : > { %v2220_v0 = vmul.f32 %v2215_v28, %v2139_v9 }
 0x86a   : > { %v2224_v49 = vmul.f32 %v2220_v0, %v2111_v52 }
 0x86c   : > { %v2226_v10 = vpack.c.bf16 %v2224_v49, %v2223_v5 }
 0x86e   : > { %2641 = vmatmul.msk.bf16.gmra.mxu2 %vm879_vm1, %v2226_v10 }
 0x8d0   : > { %v2258_v47 = vpop.f32.mrf.mxu2 }
 0x8d1   : > { %v2268_v57 = vadd.f32 %v2258_v47, %v4166_v11 }
 0x8d3   : > { %v2276_v20 = vadd.f32 %v2841_v13, %v2268_v57 }
 0x8d5   : > { %2280 = vst.msk [vmem:[#allocation20] sm:$0xff] %vm879_vm1, %v2276_v20 }
 0x8d8   : > { %v2260_v45 = vpop.f32.mrf.mxu2 }
 0x8d9   : > { %v2269_v55 = vadd.f32 %v2260_v45, %v4173_v44 }
 0x8db   : > { %v2277_v58 = vadd.f32 %v2841_v13, %v2269_v55 }
 0x8dd   : > { %2281 = vst.msk [vmem:[#allocation20 + $0x8] sm:$0xff] %vm879_vm1, %v2277_v58 }
 0x8f1   : > { %v2263_v23 = vpop.f32.mrf.mxu2 }
 0x8f2   : > { %v2270_v62 = vadd.f32 %v2263_v23, %v4175_v48 }
 0x8f4   : > { %v2278_v59 = vadd.f32 %v2841_v13, %v2270_v62 }
 0x8f6   : > { %2282 = vst.msk [vmem:[#allocation20 + $0x10] sm:$0xff] %vm879_vm1, %v2278_v59 }
 0x8f9   : > { %v2265_v63 = vpop.f32.mrf.mxu2 }
 0x8fa   : > { %v2271_v11 = vadd.f32 %v2265_v63, %v4182_v43 }
 0x8fc   : > { %v2279_v44 = vadd.f32 %v2841_v13, %v2271_v11 }
 0x8fe   : > { %2283 = vst.msk [vmem:[#allocation20 + $0x18] sm:$0xff] %vm879_vm1, %v2279_v44 }
 0x8ff   : > { %2704 = dma.vmem_to_hbm [thread:$0]  (%p2746_p3), %s2294_s0, 512, %s2296_s24, [#allocation5], %s3377_s23, %s3377_s23, %s3373_s11  }
 0x900   : > { %3321 = dma.done.wait (%p2746_p3), [#allocation5], 512  }
 0x901   : > { %3323 = vsyncadd (%p2746_p3), [#allocation5], 4294966784 }
 0x902 PF: > { %s4349_s2 = sld [smem:[#allocation29_spill]]  ;;  %s4352_s29 = smov %s3330_s30 }
 0x903   : > { %s4350_s22 = sld [smem:[#allocation31_spill]]  ;;  %s4353_s30 = smov %s3334_s15 }
 0x904   : > { %s4351_s7 = sld [smem:[#allocation30_spill]]  ;;  %s4355_s16 = smov %s3342_s17 }
 0x908   : > { %s39_s18 = sadd.s32 1, %s4349_s2  }
 0x909   : > { %p36_p4 = scmp.ge.s32.totalorder %s39_s18, 4   ;;  %s4354_s15 = smov %s4350_s22 }
 0x90a   : > { %s4356_s17 = smov %s4351_s7 }
 0x90b   :  { %38 = sbr.rel (!%p36_p4) target bundleno = 27 (0x1b), region = 218 }
 0x910   :  { %2312 = vsyncpa [#allocation4], 1 }
 0x911   :  { %2314 = vsyncpa [#allocation4 + $0x1], 1 }
 0x912   :  { %2315 = vsyncpa [#allocation7], 1 }
 0x913   :  { %2316 = vsyncpa [#allocation10], 1 }
 0x914   :  { %2318 = vsyncpa [#allocation10 + $0x1], 1 }
 0x915   :  { %2319 = vsyncpa [#allocation13], 1 }
 0x916   :  { %2321 = vsyncpa [#allocation13 + $0x1], 1 }
 0x917   :  { %2322 = vsyncpa [#allocation16], 1 }
 0x918   :  { %2324 = vsyncpa [#allocation16 + $0x1], 1 }
 0x919   :  { %2325 = vsyncpa [#allocation19], 1 }
 0x91a   :  { %2327 = vsyncpa [#allocation19 + $0x1], 1 }
 0x91b   :  { %2328 = vsyncpa [#allocation5], 1 }
 0x91c   :  { %2330 = vsyncpa [#allocation5 + $0x1], 1 }

</bundles_post_ra>
